<compile_context>
chip_gen: v6e
topology: v6e:2x2x1
jax: 0.10.0
libtpu: 0.0.40
codegen_flags: <defaults>
</compile_context>

<pallas_src>
import functools

import jax
import jax.numpy as jnp
from jax.experimental import pallas as pl
from jax.experimental.pallas import tpu as pltpu

LANE = 128
FUSED_VMEM_BUDGET = 6 * 1024 * 1024       # everything-in-VMEM fused path
RESIDENT_SLAB_BUDGET = 36 * 1024 * 1024   # resident-weight budget (safe on v7x's 64 MiB)


def _round_up(x, m):
    return (x + m - 1) // m * m


def _pick_tile(total, preferred):
    """Largest multiple of LANE that divides `total` and is <= preferred."""
    t = min(preferred, total)
    t = max(LANE, (t // LANE) * LANE)
    while total % t:
        t -= LANE
    return t


def _masked_log_softmax(x, num_valid):
    """log_softmax over the first `num_valid` lanes; padded lanes get garbage."""
    col = jax.lax.broadcasted_iota(jnp.int32, x.shape, 1)
    valid = col < num_valid
    m = jnp.max(jnp.where(valid, x, -jnp.inf), axis=1, keepdims=True)
    z = x - m
    p = jnp.where(valid, jnp.exp(z), 0.0)
    return z - jnp.log(jnp.sum(p, axis=1, keepdims=True))


# --------------------- fused single-step kernel (small graphs) ----------------
def fused_kernel(a_ref, w1_ref, deg_inv_ref, extra1_ref, w2_ref, root2_ref,
                 b2_ref, o_ref, *, num_relations, n_pad, num_classes):
    """conv1 + ReLU + conv2 + log_softmax, everything resident in VMEM.

    a_ref:      (Np, R*Np) bf16   lane-dense adjacency (dst, r*Np + src)
    w1_ref:     (R*Np, Hp) bf16   stacked relation-1 weights (row r*Np + j)
    deg_inv:    (Np, 1)    f32    1 / max(in_degree, 1)
    extra1:     (Np, Hp)   f32    root1 (node-indexed) + bias1
    w2_ref:     (R, Hp, Cp) bf16
    root2_ref:  (Hp, Cp)   bf16
    b2_ref:     (1, Cp)    f32
    o_ref:      (Np, Cp)   f32
    """
    a = a_ref[...]
    deg_inv = deg_inv_ref[...]

    # conv1 + ReLU
    h = jnp.dot(a, w1_ref[...], preferred_element_type=jnp.float32)
    h = jnp.maximum(h * deg_inv + extra1_ref[...], 0.0)
    h_bf = h.astype(jnp.bfloat16)

    # conv2: sum_r A[:, r-block] @ (h @ W2[r]); R is small and static -> unrolled.
    acc = None
    for r in range(num_relations):
        hw = jnp.dot(h_bf, w2_ref[r], preferred_element_type=jnp.float32)
        term = jnp.dot(a[:, r * n_pad:(r + 1) * n_pad], hw.astype(jnp.bfloat16),
                       preferred_element_type=jnp.float32)
        acc = term if acc is None else acc + term

    out = (acc * deg_inv
           + jnp.dot(h_bf, root2_ref[...], preferred_element_type=jnp.float32)
           + b2_ref[...])
    o_ref[...] = _masked_log_softmax(out, num_classes).astype(o_ref.dtype)


# ------------------- generic tiled aggregate kernel (large graphs) ------------
def aggr_kernel(a_ref, slab_ref, deg_inv_ref, extra_ref, o_ref, acc_ref,
                *, tile_k, slab_resident, relu, num_classes=0):
    """One (dst-tile, k-tile) step of  out = epilogue(acc * deg_inv + extra).

    Used for both convs: the "slab" is the stacked weights W1 (conv1) or the
    precomputed HW = h @ W2 (conv2); each inner step is a single MXU dot.
    """
    k = pl.program_id(1)

    @pl.when(k == 0)
    def _():
        acc_ref[...] = jnp.zeros_like(acc_ref)

    if slab_resident:
        # Full slab lives in VMEM (constant index_map -> DMA'd once); slice per k.
        koff = pl.multiple_of(k * tile_k, tile_k)
        w = slab_ref[pl.ds(koff, tile_k), :]
    else:
        w = slab_ref[...]

    acc_ref[...] += jnp.dot(a_ref[...], w, preferred_element_type=jnp.float32)

    @pl.when(k == pl.num_programs(1) - 1)
    def _():
        out = acc_ref[...] * deg_inv_ref[...] + extra_ref[...]
        if relu:
            o_ref[...] = jnp.maximum(out, 0.0).astype(o_ref.dtype)
        else:
            o_ref[...] = _masked_log_softmax(out, num_classes).astype(o_ref.dtype)


# ------------------------------ wrapper ---------------------------------------
def rgcn_forward(edge_index, edge_type, params, *, num_nodes, num_relations):
    N, R = num_nodes, num_relations
    H = params["root1"].shape[1]
    C = params["root2"].shape[1]

    Np = _round_up(N, LANE)
    Hp = _round_up(H, LANE)
    Cp = _round_up(C, LANE)
    K = R * Np

    src = edge_index[0]
    dst = edge_index[1]

    # Adjacency built DIRECTLY in its final lane-dense layout (dst, r*Np + src).
    # bf16 is exact for small integer edge multiplicities (< 256) and halves the
    # dominant HBM stream.
    a_flat = (jnp.zeros((Np, K), jnp.float32)
              .at[dst, edge_type * Np + src].add(1.0)
              .astype(jnp.bfloat16))

    deg = jnp.zeros((Np,), jnp.float32).at[dst].add(1.0)
    deg_inv = (1.0 / jnp.maximum(deg, 1.0)).reshape(Np, 1)

    # Basis decomposition: W[r] = sum_b att[r, b] * basis[b]
    w1 = jnp.einsum("rb,bnf->rnf", params["att1"], params["basis1"])   # (R, N, H)
    w2 = jnp.einsum("rb,bfc->rfc", params["att2"], params["basis2"])   # (R, H, C)

    # Zero-pad to lane-dense shapes (padding contributes exact zeros).
    w1_flat = (jnp.zeros((R, Np, Hp), jnp.float32)
               .at[:, :N, :H].set(w1)
               .reshape(K, Hp).astype(jnp.bfloat16))                   # row = r*Np + j
    extra1 = (jnp.zeros((Np, Hp), jnp.float32)
              .at[:N, :H].set(params["root1"])
              .at[:, :H].add(params["bias1"]))                          # root1 + bias1
    w2_p = jnp.zeros((R, Hp, Cp), jnp.float32).at[:, :H, :C].set(w2)
    root2_p = jnp.zeros((Hp, Cp), jnp.float32).at[:H, :C].set(params["root2"])
    b2_p = jnp.zeros((1, Cp), jnp.float32).at[0, :C].set(params["bias2"])

    # ---------------- fused path: everything fits VMEM (benchmark sizes) ------
    fused_bytes = (2 * Np * K + 2 * K * Hp + 2 * R * Hp * Cp
                   + 4 * Np * Hp + 2 * Hp * Cp + 4 * Np * Cp + 4 * Np + 4 * Cp)
    if fused_bytes <= FUSED_VMEM_BUDGET:
        out_p = pl.pallas_call(
            functools.partial(fused_kernel, num_relations=R, n_pad=Np,
                              num_classes=C),
            out_shape=jax.ShapeDtypeStruct((Np, Cp), jnp.float32),
            grid=(1,),
            in_specs=[
                pl.BlockSpec((Np, K), lambda i: (0, 0)),        # A slab
                pl.BlockSpec((K, Hp), lambda i: (0, 0)),        # W1 stacked
                pl.BlockSpec((Np, 1), lambda i: (0, 0)),        # deg_inv
                pl.BlockSpec((Np, Hp), lambda i: (0, 0)),       # root1 + b1
                pl.BlockSpec((R, Hp, Cp), lambda i: (0, 0, 0)),  # W2
                pl.BlockSpec((Hp, Cp), lambda i: (0, 0)),       # root2
                pl.BlockSpec((1, Cp), lambda i: (0, 0)),        # bias2
            ],
            out_specs=pl.BlockSpec((Np, Cp), lambda i: (0, 0)),
            compiler_params=pltpu.CompilerParams(
                dimension_semantics=("arbitrary",),
                vmem_limit_bytes=32 * 1024 * 1024,
            ),
        )(a_flat, w1_flat, deg_inv, extra1,
          w2_p.astype(jnp.bfloat16), root2_p.astype(jnp.bfloat16), b2_p)
        return out_p[:N, :C]

    # ---------------- tiled path: 2-D (dst, K) accumulator grid ---------------
    # tile_k sized for DMA efficiency (>=1-4 MB A tiles); tile_m capped so that
    # m_tiles >= 2 whenever possible (v7x megacore split on the "parallel" axis).
    tile_m = _pick_tile(Np, min(512, Np // 2 if Np >= 2 * LANE else Np))
    tile_k = _pick_tile(K, 4096)
    m_tiles = Np // tile_m
    k_tiles = K // tile_k

    a_tile_bytes = 2 * tile_m * tile_k
    slab_bytes = 2 * K * max(Hp, Cp)
    resident = (2 * slab_bytes + 4 * a_tile_bytes) <= RESIDENT_SLAB_BUDGET
    cparams = pltpu.CompilerParams(
        dimension_semantics=("parallel", "arbitrary"),
        vmem_limit_bytes=(48 if resident else 32) * 1024 * 1024,
    )

    def slab_spec(width):
        if resident:
            return pl.BlockSpec((K, width), lambda i, k: (0, 0))   # DMA'd once
        return pl.BlockSpec((tile_k, width), lambda i, k: (k, 0))  # streamed

    # ---- conv1 + ReLU ----
    h = pl.pallas_call(
        functools.partial(aggr_kernel, tile_k=tile_k, slab_resident=resident,
                          relu=True),
        out_shape=jax.ShapeDtypeStruct((Np, Hp), jnp.bfloat16),
        grid=(m_tiles, k_tiles),
        in_specs=[
            pl.BlockSpec((tile_m, tile_k), lambda i, k: (i, k)),   # A slab
            slab_spec(Hp),                                         # W1 stacked
            pl.BlockSpec((tile_m, 1), lambda i, k: (i, 0)),        # deg_inv
            pl.BlockSpec((tile_m, Hp), lambda i, k: (i, 0)),       # root1 + b1
        ],
        out_specs=pl.BlockSpec((tile_m, Hp), lambda i, k: (i, 0)),
        scratch_shapes=[pltpu.VMEM((tile_m, Hp), jnp.float32)],
        compiler_params=cparams,
    )(a_flat, w1_flat, deg_inv, extra1)

    # Precompute (tiny XLA ops): HW[r] = h @ W2[r] stacked, and the epilogue
    # root term h @ root2 + b2 -> conv2's inner loop is a single dot per k-tile.
    h_f32 = h.astype(jnp.float32)
    hw_flat = (jnp.einsum("nh,rhc->rnc", h_f32, w2_p)
               .reshape(K, Cp).astype(jnp.bfloat16))               # row = r*Np + n
    extra2 = h_f32 @ root2_p + b2_p                                 # (Np, Cp) f32

    # ---- conv2 + log_softmax ----
    out_p = pl.pallas_call(
        functools.partial(aggr_kernel, tile_k=tile_k, slab_resident=resident,
                          relu=False, num_classes=C),
        out_shape=jax.ShapeDtypeStruct((Np, Cp), jnp.float32),
        grid=(m_tiles, k_tiles),
        in_specs=[
            pl.BlockSpec((tile_m, tile_k), lambda i, k: (i, k)),   # A slab
            slab_spec(Cp),                                         # HW stacked
            pl.BlockSpec((tile_m, 1), lambda i, k: (i, 0)),        # deg_inv
            pl.BlockSpec((tile_m, Cp), lambda i, k: (i, 0)),       # h@root2 + b2
        ],
        out_specs=pl.BlockSpec((tile_m, Cp), lambda i, k: (i, 0)),
        scratch_shapes=[pltpu.VMEM((tile_m, Cp), jnp.float32)],
        compiler_params=cparams,
    )(a_flat, hw_flat, deg_inv, extra2)

    return out_p[:N, :C]


# -------------------------- pure-JAX reference --------------------------------
def rgcn_reference(edge_index, edge_type, params, *, num_nodes, num_relations):
    N = num_nodes
    src, dst = edge_index[0], edge_index[1]
    w1 = jnp.einsum("rb,bnf->rnf", params["att1"], params["basis1"])
    w2 = jnp.einsum("rb,bfc->rfc", params["att2"], params["basis2"])
    inv = 1.0 / jnp.maximum(jnp.zeros((N,), jnp.float32).at[dst].add(1.0), 1.0)

    # conv1: x is None -> message = W1[edge_type][src]
    msg1 = w1[edge_type, src]                                            # (E, H)
    aggr1 = (jnp.zeros((N, w1.shape[2]), jnp.float32).at[dst].add(msg1)
             * inv[:, None])
    h = jax.nn.relu(aggr1 + params["root1"] + params["bias1"])

    # conv2: message = h[src] @ W2[edge_type]
    msg2 = jnp.einsum("eh,ehc->ec", h[src], w2[edge_type])
    aggr2 = (jnp.zeros((N, w2.shape[2]), jnp.float32).at[dst].add(msg2)
             * inv[:, None])
    out = aggr2 + h @ params["root2"] + params["bias2"]
    return jax.nn.log_softmax(out, axis=1)


# --------------------------------- main ---------------------------------------
def _make_case(key, *, N, HID, C, R, B, E):
    ks = jax.random.split(key, 12)
    src = jax.random.randint(ks[0], (E,), 0, N)
    dst = jax.random.randint(ks[1], (E,), 0, N)
    edge_index = jnp.stack([src, dst]).astype(jnp.int32)
    edge_type = jax.random.randint(ks[2], (E,), 0, R).astype(jnp.int32)

    def init(k, shape, fan):
        return (jax.random.uniform(k, shape, jnp.float32, -1.0, 1.0)
                / jnp.sqrt(jnp.float32(fan)))

    params = {
        "basis1": init(ks[3], (B, N, HID), N),
        "att1":   init(ks[4], (R, B), B),
        "root1":  init(ks[5], (N, HID), N),
        "bias1":  jnp.zeros((HID,), jnp.float32),
        "basis2": init(ks[6], (B, HID, C), HID),
        "att2":   init(ks[7], (R, B), B),
        "root2":  init(ks[8], (HID, C), HID),
        "bias2":  jnp.zeros((C,), jnp.float32),
    }
    return edge_index, edge_type, params


def _check_case(key, *, N, HID, C, R, B, E):
    edge_index, edge_type, params = _make_case(key, N=N, HID=HID, C=C, R=R, B=B, E=E)
    out = rgcn_forward(edge_index, edge_type, params,
                       num_nodes=N, num_relations=R)
    out = jax.block_until_ready(out)

    assert out.shape == (N, C)
    assert bool(jnp.all(jnp.isfinite(out)))
    row_sums = jnp.sum(jnp.exp(out), axis=1)
    assert bool(jnp.all(jnp.abs(row_sums - 1.0) < 1e-3))

    ref = rgcn_reference(edge_index, edge_type, params,
                         num_nodes=N, num_relations=R)
    assert float(jnp.max(jnp.abs(out - ref))) < 0.1, \
        float(jnp.max(jnp.abs(out - ref)))


if __name__ == "__main__":
    key = jax.random.PRNGKey(0)
    k1, k2 = jax.random.split(key)

    # Shipped benchmark size (featureless graph: in_channels == num_nodes).
    # Exercises the fused single-kernel path.
    _check_case(k1, N=64, HID=16, C=8, R=4, B=30, E=256)

    # Larger graph to exercise the tiled 2-D accumulator grid
    # (Np=1536 -> grid (3, 2), resident weight slabs, >=2 parallel m-tiles).
    _check_case(k2, N=1500, HID=16, C=8, R=4, B=30, E=6000)

    print("KERNEL_OK")
</pallas_src>

<mosaic_0001>
module attributes {stable_mosaic.version = 11 : i64} {
  func.func @fused_kernel(%arg0: i32, %arg1: memref<128x512xbf16, #tpu.memory_space<vmem>>, %arg2: memref<512x128xbf16, #tpu.memory_space<vmem>>, %arg3: memref<128x1xf32, #tpu.memory_space<vmem>>, %arg4: memref<128x128xf32, #tpu.memory_space<vmem>>, %arg5: memref<4x128x128xbf16, #tpu.memory_space<vmem>>, %arg6: memref<128x128xbf16, #tpu.memory_space<vmem>>, %arg7: memref<1x128xf32, #tpu.memory_space<vmem>>, %arg8: memref<128x128xf32, #tpu.memory_space<vmem>>) attributes {dimension_semantics = [#tpu.dimension_semantics<arbitrary>], iteration_bounds = array<i64: 1>, scalar_prefetch = 0 : i64, scratch_operands = 0 : i64, tpu.core_type = #tpu.core_type<tc>, window_params = [{pipeline_mode = #tpu.pipeline_mode<synchronous>, transform_indices = @transform_0, window_bounds = array<i64: 128, 512>}, {pipeline_mode = #tpu.pipeline_mode<synchronous>, transform_indices = @transform_1, window_bounds = array<i64: 512, 128>}, {pipeline_mode = #tpu.pipeline_mode<synchronous>, transform_indices = @transform_2, window_bounds = array<i64: 128, 1>}, {pipeline_mode = #tpu.pipeline_mode<synchronous>, transform_indices = @transform_3, window_bounds = array<i64: 128, 128>}, {pipeline_mode = #tpu.pipeline_mode<synchronous>, transform_indices = @transform_4, window_bounds = array<i64: 4, 128, 128>}, {pipeline_mode = #tpu.pipeline_mode<synchronous>, transform_indices = @transform_5, window_bounds = array<i64: 128, 128>}, {pipeline_mode = #tpu.pipeline_mode<synchronous>, transform_indices = @transform_6, window_bounds = array<i64: 1, 128>}, {pipeline_mode = #tpu.pipeline_mode<synchronous>, transform_indices = @transform_7, window_bounds = array<i64: 128, 128>}]} {
    %c0 = arith.constant 0 : index
    %c0_0 = arith.constant 0 : index
    %0 = vector.load %arg1[%c0, %c0_0] : memref<128x512xbf16, #tpu.memory_space<vmem>>, vector<128x512xbf16>
    %c0_1 = arith.constant 0 : index
    %c0_2 = arith.constant 0 : index
    %1 = vector.load %arg3[%c0_1, %c0_2] : memref<128x1xf32, #tpu.memory_space<vmem>>, vector<128x1xf32>
    %c0_3 = arith.constant 0 : index
    %c0_4 = arith.constant 0 : index
    %2 = vector.load %arg2[%c0_3, %c0_4] : memref<512x128xbf16, #tpu.memory_space<vmem>>, vector<512x128xbf16>
    %cst = arith.constant dense<0.000000e+00> : vector<128x128xf32>
    %3 = tpu.matmul %0, %2, %cst {dimension_numbers = #tpu.dot_dimension_numbers<[1], [0], [0], [1], [0, 0, 1, 1], [], []>} : vector<128x512xbf16>, vector<512x128xbf16>, vector<128x128xf32> -> vector<128x128xf32>
    %4 = vector.broadcast %1 : vector<128x1xf32> to vector<128x128xf32>
    %5 = arith.mulf %3, %4 : vector<128x128xf32>
    %c0_5 = arith.constant 0 : index
    %c0_6 = arith.constant 0 : index
    %6 = vector.load %arg4[%c0_5, %c0_6] : memref<128x128xf32, #tpu.memory_space<vmem>>, vector<128x128xf32>
    %7 = arith.addf %5, %6 : vector<128x128xf32>
    %cst_7 = arith.constant 0.000000e+00 : f32
    %8 = vector.broadcast %cst_7 : f32 to vector<128x128xf32>
    %9 = arith.maximumf %7, %8 : vector<128x128xf32>
    %10 = arith.truncf %9 : vector<128x128xf32> to vector<128x128xbf16>
    %c0_8 = arith.constant 0 : index
    %c0_9 = arith.constant 0 : index
    %c0_10 = arith.constant 0 : index
    %11 = vector.load %arg5[%c0_8, %c0_9, %c0_10] : memref<4x128x128xbf16, #tpu.memory_space<vmem>>, vector<1x128x128xbf16>
    %12 = vector.shape_cast %11 : vector<1x128x128xbf16> to vector<128x128xbf16>
    %cst_11 = arith.constant dense<0.000000e+00> : vector<128x128xf32>
    %13 = tpu.matmul %10, %12, %cst_11 {dimension_numbers = #tpu.dot_dimension_numbers<[1], [0], [0], [1], [0, 0, 1, 1], [], []>} : vector<128x128xbf16>, vector<128x128xbf16>, vector<128x128xf32> -> vector<128x128xf32>
    %14 = vector.extract_strided_slice %0 {offsets = [0, 0], sizes = [128, 128], strides = [1, 1]} : vector<128x512xbf16> to vector<128x128xbf16>
    %15 = arith.truncf %13 : vector<128x128xf32> to vector<128x128xbf16>
    %cst_12 = arith.constant dense<0.000000e+00> : vector<128x128xf32>
    %16 = tpu.matmul %14, %15, %cst_12 {dimension_numbers = #tpu.dot_dimension_numbers<[1], [0], [0], [1], [0, 0, 1, 1], [], []>} : vector<128x128xbf16>, vector<128x128xbf16>, vector<128x128xf32> -> vector<128x128xf32>
    %c1 = arith.constant 1 : index
    %c0_13 = arith.constant 0 : index
    %c0_14 = arith.constant 0 : index
    %17 = vector.load %arg5[%c1, %c0_13, %c0_14] : memref<4x128x128xbf16, #tpu.memory_space<vmem>>, vector<1x128x128xbf16>
    %18 = vector.shape_cast %17 : vector<1x128x128xbf16> to vector<128x128xbf16>
    %cst_15 = arith.constant dense<0.000000e+00> : vector<128x128xf32>
    %19 = tpu.matmul %10, %18, %cst_15 {dimension_numbers = #tpu.dot_dimension_numbers<[1], [0], [0], [1], [0, 0, 1, 1], [], []>} : vector<128x128xbf16>, vector<128x128xbf16>, vector<128x128xf32> -> vector<128x128xf32>
    %20 = vector.extract_strided_slice %0 {offsets = [0, 128], sizes = [128, 128], strides = [1, 1]} : vector<128x512xbf16> to vector<128x128xbf16>
    %21 = arith.truncf %19 : vector<128x128xf32> to vector<128x128xbf16>
    %cst_16 = arith.constant dense<0.000000e+00> : vector<128x128xf32>
    %22 = tpu.matmul %20, %21, %cst_16 {dimension_numbers = #tpu.dot_dimension_numbers<[1], [0], [0], [1], [0, 0, 1, 1], [], []>} : vector<128x128xbf16>, vector<128x128xbf16>, vector<128x128xf32> -> vector<128x128xf32>
    %23 = arith.addf %16, %22 : vector<128x128xf32>
    %c2 = arith.constant 2 : index
    %c0_17 = arith.constant 0 : index
    %c0_18 = arith.constant 0 : index
    %24 = vector.load %arg5[%c2, %c0_17, %c0_18] : memref<4x128x128xbf16, #tpu.memory_space<vmem>>, vector<1x128x128xbf16>
    %25 = vector.shape_cast %24 : vector<1x128x128xbf16> to vector<128x128xbf16>
    %cst_19 = arith.constant dense<0.000000e+00> : vector<128x128xf32>
    %26 = tpu.matmul %10, %25, %cst_19 {dimension_numbers = #tpu.dot_dimension_numbers<[1], [0], [0], [1], [0, 0, 1, 1], [], []>} : vector<128x128xbf16>, vector<128x128xbf16>, vector<128x128xf32> -> vector<128x128xf32>
    %27 = vector.extract_strided_slice %0 {offsets = [0, 256], sizes = [128, 128], strides = [1, 1]} : vector<128x512xbf16> to vector<128x128xbf16>
    %28 = arith.truncf %26 : vector<128x128xf32> to vector<128x128xbf16>
    %cst_20 = arith.constant dense<0.000000e+00> : vector<128x128xf32>
    %29 = tpu.matmul %27, %28, %cst_20 {dimension_numbers = #tpu.dot_dimension_numbers<[1], [0], [0], [1], [0, 0, 1, 1], [], []>} : vector<128x128xbf16>, vector<128x128xbf16>, vector<128x128xf32> -> vector<128x128xf32>
    %30 = arith.addf %23, %29 : vector<128x128xf32>
    %c3 = arith.constant 3 : index
    %c0_21 = arith.constant 0 : index
    %c0_22 = arith.constant 0 : index
    %31 = vector.load %arg5[%c3, %c0_21, %c0_22] : memref<4x128x128xbf16, #tpu.memory_space<vmem>>, vector<1x128x128xbf16>
    %32 = vector.shape_cast %31 : vector<1x128x128xbf16> to vector<128x128xbf16>
    %cst_23 = arith.constant dense<0.000000e+00> : vector<128x128xf32>
    %33 = tpu.matmul %10, %32, %cst_23 {dimension_numbers = #tpu.dot_dimension_numbers<[1], [0], [0], [1], [0, 0, 1, 1], [], []>} : vector<128x128xbf16>, vector<128x128xbf16>, vector<128x128xf32> -> vector<128x128xf32>
    %34 = vector.extract_strided_slice %0 {offsets = [0, 384], sizes = [128, 128], strides = [1, 1]} : vector<128x512xbf16> to vector<128x128xbf16>
    %35 = arith.truncf %33 : vector<128x128xf32> to vector<128x128xbf16>
    %cst_24 = arith.constant dense<0.000000e+00> : vector<128x128xf32>
    %36 = tpu.matmul %34, %35, %cst_24 {dimension_numbers = #tpu.dot_dimension_numbers<[1], [0], [0], [1], [0, 0, 1, 1], [], []>} : vector<128x128xbf16>, vector<128x128xbf16>, vector<128x128xf32> -> vector<128x128xf32>
    %37 = arith.addf %30, %36 : vector<128x128xf32>
    %38 = vector.broadcast %1 : vector<128x1xf32> to vector<128x128xf32>
    %39 = arith.mulf %37, %38 : vector<128x128xf32>
    %c0_25 = arith.constant 0 : index
    %c0_26 = arith.constant 0 : index
    %40 = vector.load %arg6[%c0_25, %c0_26] : memref<128x128xbf16, #tpu.memory_space<vmem>>, vector<128x128xbf16>
    %cst_27 = arith.constant dense<0.000000e+00> : vector<128x128xf32>
    %41 = tpu.matmul %10, %40, %cst_27 {dimension_numbers = #tpu.dot_dimension_numbers<[1], [0], [0], [1], [0, 0, 1, 1], [], []>} : vector<128x128xbf16>, vector<128x128xbf16>, vector<128x128xf32> -> vector<128x128xf32>
    %42 = arith.addf %39, %41 : vector<128x128xf32>
    %c0_28 = arith.constant 0 : index
    %c0_29 = arith.constant 0 : index
    %43 = vector.load %arg7[%c0_28, %c0_29] : memref<1x128xf32, #tpu.memory_space<vmem>>, vector<1x128xf32>
    %44 = vector.broadcast %43 : vector<1x128xf32> to vector<128x128xf32>
    %45 = arith.addf %42, %44 : vector<128x128xf32>
    %46 = tpu.iota {dimensions = array<i32: 1>} : vector<128x128xi32>
    %c8_i32 = arith.constant 8 : i32
    %47 = vector.broadcast %c8_i32 : i32 to vector<128x128xi32>
    %48 = arith.cmpi slt, %46, %47 : vector<128x128xi32>
    %cst_30 = arith.constant 0xFF800000 : f32
    %49 = vector.broadcast %cst_30 : f32 to vector<128x128xf32>
    %50 = arith.select %48, %45, %49 : vector<128x128xi1>, vector<128x128xf32>
    %cst_31 = arith.constant dense<0xFF800000> : vector<128xf32>
    %51 = vector.multi_reduction <maximumf>, %50, %cst_31 [1] : vector<128x128xf32> to vector<128xf32>
    %52 = vector.shape_cast %51 : vector<128xf32> to vector<128x1xf32>
    %53 = vector.broadcast %52 : vector<128x1xf32> to vector<128x128xf32>
    %54 = arith.subf %45, %53 : vector<128x128xf32>
    %55 = math.exp %54 : vector<128x128xf32>
    %cst_32 = arith.constant 0.000000e+00 : f32
    %56 = vector.broadcast %cst_32 : f32 to vector<128x128xf32>
    %57 = arith.select %48, %55, %56 : vector<128x128xi1>, vector<128x128xf32>
    %cst_33 = arith.constant dense<0.000000e+00> : vector<128xf32>
    %58 = vector.multi_reduction <add>, %57, %cst_33 [1] : vector<128x128xf32> to vector<128xf32>
    %59 = vector.shape_cast %58 : vector<128xf32> to vector<128x1xf32>
    %60 = math.log %59 : vector<128x1xf32>
    %61 = vector.broadcast %60 : vector<128x1xf32> to vector<128x128xf32>
    %62 = arith.subf %54, %61 : vector<128x128xf32>
    %c0_34 = arith.constant 0 : index
    %c0_35 = arith.constant 0 : index
    %63 = vector.load %arg8[%c0_34, %c0_35] : memref<128x128xf32, #tpu.memory_space<vmem>>, vector<128x128xf32>
    tpu.vector_store %arg8[%c0_34, %c0_35], %62 {strides = array<i32>} : memref<128x128xf32, #tpu.memory_space<vmem>>, vector<128x128xf32>,
    return
  }
  func.func @transform_0(%arg0: i32) -> (i32, i32) {
    %c0_i32 = arith.constant 0 : i32
    %c0_i32_0 = arith.constant 0 : i32
    %c0_i32_1 = arith.constant 0 : i32
    return %c0_i32, %c0_i32_0 : i32, i32
  }
  func.func @transform_1(%arg0: i32) -> (i32, i32) {
    %c0_i32 = arith.constant 0 : i32
    %c0_i32_0 = arith.constant 0 : i32
    %c0_i32_1 = arith.constant 0 : i32
    return %c0_i32, %c0_i32_0 : i32, i32
  }
  func.func @transform_2(%arg0: i32) -> (i32, i32) {
    %c0_i32 = arith.constant 0 : i32
    %c0_i32_0 = arith.constant 0 : i32
    %c0_i32_1 = arith.constant 0 : i32
    return %c0_i32, %c0_i32_0 : i32, i32
  }
  func.func @transform_3(%arg0: i32) -> (i32, i32) {
    %c0_i32 = arith.constant 0 : i32
    %c0_i32_0 = arith.constant 0 : i32
    %c0_i32_1 = arith.constant 0 : i32
    return %c0_i32, %c0_i32_0 : i32, i32
  }
  func.func @transform_4(%arg0: i32) -> (i32, i32, i32) {
    %c0_i32 = arith.constant 0 : i32
    %c0_i32_0 = arith.constant 0 : i32
    %c0_i32_1 = arith.constant 0 : i32
    %c0_i32_2 = arith.constant 0 : i32
    return %c0_i32, %c0_i32_0, %c0_i32_1 : i32, i32, i32
  }
  func.func @transform_5(%arg0: i32) -> (i32, i32) {
    %c0_i32 = arith.constant 0 : i32
    %c0_i32_0 = arith.constant 0 : i32
    %c0_i32_1 = arith.constant 0 : i32
    return %c0_i32, %c0_i32_0 : i32, i32
  }
  func.func @transform_6(%arg0: i32) -> (i32, i32) {
    %c0_i32 = arith.constant 0 : i32
    %c0_i32_0 = arith.constant 0 : i32
    %c0_i32_1 = arith.constant 0 : i32
    return %c0_i32, %c0_i32_0 : i32, i32
  }
  func.func @transform_7(%arg0: i32) -> (i32, i32) {
    %c0_i32 = arith.constant 0 : i32
    %c0_i32_0 = arith.constant 0 : i32
    %c0_i32_1 = arith.constant 0 : i32
    return %c0_i32, %c0_i32_0 : i32, i32
  }
}

</mosaic_0001>

<bundles_post_ra>
// kernel: tpu_custom_call.1
= control target key start
LH: loop header
LB: loop body
LE: loop exit
PB: predicated region body
PF: predicated region fallthrough
CT: control target
= control target key end

     0   :  { %12 = vsyncpa [#allocation3], 0  ;;  %s4163_s0 = inlined_call_operand.hbm [shape: bf16[128,512], index: 0, kind: input, shape index: {}]   ;;  %s4164_s1 = inlined_call_operand.hbm [shape: bf16[512,128], index: 1, kind: input, shape index: {}]   ;;  %s4165_s2 = inlined_call_operand.vmem [shape: f32[128,1], index: 2, kind: input, shape index: {}]   ;;  %s4166_s3 = inlined_call_operand.vmem [shape: f32[128,128], index: 3, kind: input, shape index: {}]   ;;  %s4167_s4 = inlined_call_operand.hbm [shape: bf16[4,128,128], index: 4, kind: input, shape index: {}]   ;;  %s4168_s5 = inlined_call_operand.hbm [shape: bf16[128,128], index: 5, kind: input, shape index: {}]   ;;  %s4169_s6 = inlined_call_operand.vmem [shape: f32[1,128], index: 6, kind: input, shape index: {}]   ;;  %s4170_s7 = inlined_call_operand.hbm [shape: f32[128,128], index: 7, kind: output, shape index: {}]  }
   0x1   :  { %13 = vsyncpa [#allocation6], 0 }
   0x2   :  { %14 = vsyncpa [#allocation9], 0 }
   0x3   :  { %15 = vsyncpa [#allocation4], 0  ;;  %s3446_s24 = smov [#allocation5]  }
   0x4   :  { %s33_s25 = sshll.u32 %s3446_s24, 4  ;;  %s34_s25 = int_to_ptr.vmem [resolvable:$true] %s33_s25 }
   0x5   :  { %s3346_s26 = scalar_lea.vmem %s34_s25, 4096  ;;  %p3351_p1 = scmp.lt.s32.totalorder %s34_s25, %s34_s25 }
   0x6   :  { %p3347_p0 = scmp.ne.s32.totalorder %s34_s25, %s3346_s26  ;;  %p3352_p2 = scmp.lt.s32.totalorder %s3346_s26, %s3346_s26 }
   0x8   :  { %p3353_p3 = por %p3352_p2, %p3351_p1 }
   0xa   :  { %p3354_p4 = pnand %p3353_p3, %p3347_p0 }
   0xc   :  { %3357 = shalt.err (!%p3354_p4)
}
   0xd   :  { %s3447_s27 = smov 64   ;;  %s3448_s28 = smov 4  }
   0xe   :  { %39 = dma.hbm_to_vmem [thread:$0]  %s4164_s1, 4096, %s34_s25, [#allocation6], %s3447_s27, %s3447_s27, %s3448_s28  }
   0xf   :  { %s3449_s8 = smov [#allocation2]  }
  0x10   :  { %s21_s9 = sshll.u32 %s3449_s8, 4  ;;  %s22_s9 = int_to_ptr.vmem [resolvable:$true] %s21_s9 }
  0x11   :  { %s3366_s10 = scalar_lea.vmem %s22_s9, 4096  ;;  %p3371_p6 = scmp.lt.s32.totalorder %s22_s9, %s22_s9 }
  0x12   :  { %p3367_p5 = scmp.ne.s32.totalorder %s22_s9, %s3366_s10  ;;  %p3372_p7 = scmp.lt.s32.totalorder %s3366_s10, %s3366_s10 }
  0x14   :  { %p3373_p8 = por %p3372_p7, %p3371_p6 }
  0x16   :  { %p3374_p9 = pnand %p3373_p8, %p3367_p5 }
  0x18   :  { %3377 = shalt.err (!%p3374_p9)
}
  0x19   :  { %s3450_s11 = smov 256   ;;  %s3451_s12 = smov 16  }
  0x1a   :  { %27 = dma.hbm_to_vmem [thread:$0]  %s4163_s0, 4096, %s22_s9, [#allocation3], %s3450_s11, %s3450_s11, %s3451_s12  }
  0x1b   :  { %s3452_s15 = smov [#allocation7]   ;;  %s3453_s17 = smov [#allocation8]  }
  0x1c   :  { %s49_s16 = sshll.u32 %s3452_s15, 4  ;;  %s61_s1 = sshll.u32 %s3453_s17, 4  ;;  %s50_s16 = int_to_ptr.vmem [resolvable:$true] %s49_s16  ;;  %s62_s1 = int_to_ptr.vmem [resolvable:$true] %s61_s1 }
  0x1d   :  { %s3386_s18 = scalar_lea.vmem %s50_s16, 4096  ;;  %p3391_p11 = scmp.lt.s32.totalorder %s50_s16, %s50_s16 }
  0x1e   :  { %p3387_p10 = scmp.ne.s32.totalorder %s50_s16, %s3386_s18  ;;  %p3392_p12 = scmp.lt.s32.totalorder %s3386_s18, %s3386_s18 }
  0x20   :  { %p3393_p13 = por %p3392_p12, %p3391_p11 }
  0x22   :  { %p3394_p0 = pnand %p3393_p13, %p3387_p10 }
  0x24   :  { %3397 = shalt.err (!%p3394_p0)
}
  0x25   :  { %55 = dma.hbm_to_vmem [thread:$0]  %s4167_s4, 4096, %s50_s16, [#allocation6], %s3447_s27, %s3447_s27, %s3448_s28  }
  0x26   :  { %s3406_s0 = scalar_lea.vmem %s62_s1, 1024  ;;  %p3411_p2 = scmp.lt.s32.totalorder %s62_s1, %s62_s1 }
  0x27   :  { %p3407_p1 = scmp.ne.s32.totalorder %s62_s1, %s3406_s0  ;;  %p3412_p3 = scmp.lt.s32.totalorder %s3406_s0, %s3406_s0 }
  0x29   :  { %p3413_p4 = por %p3412_p3, %p3411_p2 }
  0x2b   :  { %p3414_p5 = pnand %p3413_p4, %p3407_p1 }
  0x2d   :  { %3417 = shalt.err (!%p3414_p5)
}
  0x2e   :  { %67 = dma.hbm_to_vmem [thread:$0]  %s4168_s5, 1024, %s62_s1, [#allocation9], %s3447_s27, %s3447_s27, %s3448_s28  }
  0x2f   :  { %3438 = dma.done.wait [#allocation3], 4096  }
  0x30   :  { %3439 = vsyncadd [#allocation3], 4294963200 }
  0x31   :  { %3440 = dma.done.wait [#allocation6], 8192  }
  0x32   :  { %3441 = vsyncadd [#allocation6], 4294959104 }
  0x33   :  { %3442 = dma.done.wait [#allocation9], 1024  }
  0x34   :  { %3443 = vsyncadd [#allocation9], 4294966272  ;;  %v3454_v0 = vmov 0   ;;  %v3133_v1 = vld [vmem:[#allocation5 + $0x78] sm:$0xff]   ;;  %v3137_v5 = vld [vmem:[#allocation5 + $0x70] sm:$0xff]  }
  0x35   :  { %3131 = vset.pattern.permute.xlu0 %v3454_v0  ;;  %3132 = vset.pattern.permute.xlu1 %v3454_v0  ;;  %v3134_v2 = vld [vmem:[#allocation5 + $0xf8] sm:$0xff]   ;;  %v3138_v6 = vld [vmem:[#allocation5 + $0xf0] sm:$0xff]   ;;  %v3141_v9 = vld [vmem:[#allocation5 + $0x68] sm:$0xff]  }
  0x36   :  { %2543 = vmatprep.subr.bf16.mxu0 %v3133_v1  ;;  %v3135_v3 = vld [vmem:[#allocation5 + $0x38] sm:$0xff]   ;;  %2607 = vmatprep.subr.bf16.mxu1 %v3134_v2  ;;  %v3139_v7 = vld [vmem:[#allocation5 + $0x30] sm:$0xff]   ;;  %v3142_v10 = vld [vmem:[#allocation5 + $0xe8] sm:$0xff]  }
  0x37   :  { %v3136_v4 = vld [vmem:[#allocation5 + $0xb8] sm:$0xff]   ;;  %2544 = vmatpush3.bf16.msra.mxu0 %v3135_v3  ;;  %v3140_v8 = vld [vmem:[#allocation5 + $0xb0] sm:$0xff]   ;;  %v3143_v11 = vld [vmem:[#allocation5 + $0x28] sm:$0xff]  }
  0x38   :  { %2608 = vmatpush3.bf16.msra.mxu1 %v3136_v4  ;;  %2545 = vmatprep.subr.bf16.mxu0 %v3137_v5  ;;  %v3144_v12 = vld [vmem:[#allocation5 + $0xa8] sm:$0xff]   ;;  %v3145_v13 = vld [vmem:[#allocation5 + $0x60] sm:$0xff]   ;;  %v3149_v17 = vld [vmem:[#allocation5 + $0x58] sm:$0xff]  }
  0x39   :  { %2609 = vmatprep.subr.bf16.mxu1 %v3138_v6  ;;  %v3146_v14 = vld [vmem:[#allocation5 + $0xe0] sm:$0xff]   ;;  %v3150_v18 = vld [vmem:[#allocation5 + $0xd8] sm:$0xff]   ;;  %v3153_v21 = vld [vmem:[#allocation5 + $0x50] sm:$0xff]  }
  0x3a   :  { %v3147_v15 = vld [vmem:[#allocation5 + $0x20] sm:$0xff]   ;;  %v3151_v19 = vld [vmem:[#allocation5 + $0x18] sm:$0xff]   ;;  %v3154_v22 = vld [vmem:[#allocation5 + $0xd0] sm:$0xff]  }
  0x3b   :  { %2546 = vmatpush3.bf16.msra.mxu0 %v3139_v7  ;;  %v3148_v16 = vld [vmem:[#allocation5 + $0xa0] sm:$0xff]   ;;  %v3152_v20 = vld [vmem:[#allocation5 + $0x98] sm:$0xff]   ;;  %v3155_v23 = vld [vmem:[#allocation5 + $0x10] sm:$0xff]  }
  0x3c   :  { %2610 = vmatpush3.bf16.msra.mxu1 %v3140_v8  ;;  %2547 = vmatprep.subr.bf16.mxu0 %v3141_v9  ;;  %v3156_v24 = vld [vmem:[#allocation5 + $0x90] sm:$0xff]   ;;  %v3157_v25 = vld [vmem:[#allocation5 + $0x48] sm:$0xff]   ;;  %v3161_v29 = vld [vmem:[#allocation5 + $0x40] sm:$0xff]  }
  0x3d   :  { %2611 = vmatprep.subr.bf16.mxu1 %v3142_v10  ;;  %v3158_v26 = vld [vmem:[#allocation5 + $0xc8] sm:$0xff]   ;;  %v3162_v30 = vld [vmem:[#allocation5 + $0xc0] sm:$0xff]   ;;  %v117_v48 = vld [vmem:[%s4165_s2 + $0x10] sm:$0xff] }
  0x3e   :  { %v3159_v27 = vld [vmem:[#allocation5 + $0x8] sm:$0xff]   ;;  %v3163_v31 = vld [vmem:[#allocation5] sm:$0xff]   ;;  %753 = vperm.xlu1 %3132, %v117_v48   ;;  %v118_v51 = vld [vmem:[%s4165_s2 + $0x18] sm:$0xff] }
  0x3f   :  { %2548 = vmatpush3.bf16.msra.mxu0 %v3143_v11  ;;  %v3160_v28 = vld [vmem:[#allocation5 + $0x88] sm:$0xff]   ;;  %v3164_v32 = vld [vmem:[#allocation5 + $0x80] sm:$0xff]   ;;  %v3213_v57 = vld [vmem:[#allocation7 + $0x78] sm:$0xff]  }
  0x40   :  { %2612 = vmatpush3.bf16.msra.mxu1 %v3144_v12  ;;  %2549 = vmatprep.subr.bf16.mxu0 %v3145_v13  ;;  %v3519_v33 = vld [vmem:[#allocation2] ss:$16 sps:$4 sm:$0xff]   ;;  %v3521_v34 = vld [vmem:[#allocation2 + $0x4] ss:$16 sps:$4 sm:$0xff]   ;;  %v3168_v35 = vld [vmem:[#allocation2 + $0x8] ss:$16 sps:$4 sm:$0xff]  }
  0x41   :  { %2613 = vmatprep.subr.bf16.mxu1 %v3146_v14  ;;  %v3170_v36 = vld [vmem:[#allocation2 + $0xc] ss:$16 sps:$4 sm:$0xff]   ;;  %579 = vmatprep.mubr.bf16.mxu0 %v3521_v34  ;;  %v3171_v37 = vld [vmem:[#allocation2 + $0x24] ss:$16 sps:$4 sm:$0xff]   ;;  %v3175_v39 = vld [vmem:[#allocation2 + $0x20] ss:$16 sps:$4 sm:$0xff]  }
  0x42   :  { %676 = vmatprep.mubr.bf16.mxu1 %v3170_v36  ;;  %v3173_v38 = vld [vmem:[#allocation2 + $0x2c] ss:$16 sps:$4 sm:$0xff]   ;;  %v3176_v40 = vld [vmem:[#allocation2 + $0x28] ss:$16 sps:$4 sm:$0xff]   ;;  %v3177_v41 = vld [vmem:[#allocation2 + $0x44] ss:$16 sps:$4 sm:$0xff]   ;;  %758 = vperm.xlu1 %3132, %v118_v51  }
  0x43   :  { %2550 = vmatpush3.bf16.msra.mxu0 %v3147_v15  ;;  %v3179_v42 = vld [vmem:[#allocation2 + $0x4c] ss:$16 sps:$4 sm:$0xff]   ;;  %v3181_v43 = vld [vmem:[#allocation2 + $0x40] ss:$16 sps:$4 sm:$0xff]   ;;  %v3182_v44 = vld [vmem:[#allocation2 + $0x48] ss:$16 sps:$4 sm:$0xff]  }
  0x44   :  { %2614 = vmatpush3.bf16.msra.mxu1 %v3148_v16  ;;  %2551 = vmatprep.subr.bf16.mxu0 %v3149_v17  ;;  %v3183_v45 = vld [vmem:[#allocation2 + $0x64] ss:$16 sps:$4 sm:$0xff]   ;;  %v3185_v46 = vld [vmem:[#allocation2 + $0x6c] ss:$16 sps:$4 sm:$0xff]   ;;  %v3534_v50 = vld [vmem:[#allocation2 + $0x60] ss:$16 sps:$4 sm:$0xff]  }
  0x45   :  { %2615 = vmatprep.subr.bf16.mxu1 %v3150_v18  ;;  %v115_v47 = vld [vmem:[%s4165_s2] sm:$0xff]  ;;  %v116_v49 = vld [vmem:[%s4165_s2 + $0x8] sm:$0xff]  ;;  %v3214_v58 = vld [vmem:[#allocation7 + $0x38] sm:$0xff]  }
  0x46   :  { %743 = vperm.xlu0 %3131, %v115_v47   ;;  %v3188_v52 = vld [vmem:[#allocation2 + $0x68] ss:$16 sps:$4 sm:$0xff]   ;;  %v3539_v53 = vld [vmem:[#allocation2 + $0x84] ss:$16 sps:$4 sm:$0xff]   ;;  %v3191_v54 = vld [vmem:[#allocation2 + $0x8c] ss:$16 sps:$4 sm:$0xff]  }
  0x47   :  { %2552 = vmatpush3.bf16.msra.mxu0 %v3151_v19  ;;  %v119_v55 = vld [vmem:[%s4165_s2 + $0x20] sm:$0xff]  ;;  %v120_v56 = vld [vmem:[%s4165_s2 + $0x28] sm:$0xff]  ;;  %v121_v59 = vld [vmem:[%s4165_s2 + $0x30] sm:$0xff] }
  0x48   :  { %2616 = vmatpush3.bf16.msra.mxu1 %v3152_v20  ;;  %2553 = vmatprep.subr.bf16.mxu0 %v3153_v21  ;;  %v3215_v60 = vld [vmem:[#allocation7 + $0x70] sm:$0xff]   ;;  %v122_v62 = vld [vmem:[%s4165_s2 + $0x38] sm:$0xff]  ;;  %v123_v3 = vld [vmem:[%s4165_s2 + $0x40] sm:$0xff] }
  0x49   :  { %2617 = vmatprep.subr.bf16.mxu1 %v3154_v22  ;;  %v3552_v61 = vld [vmem:[#allocation2 + $0x80] ss:$16 sps:$4 sm:$0xff]   ;;  %v3194_v0 = vld [vmem:[#allocation2 + $0x88] ss:$16 sps:$4 sm:$0xff]   ;;  %v3557_v1 = vld [vmem:[#allocation2 + $0xa4] ss:$16 sps:$4 sm:$0xff]   ;;  %768 = vperm.xlu1 %3132, %v120_v56  }
  0x4a   :  { %748 = vperm.xlu0 %3131, %v116_v49   ;;  %v3216_v63 = vld [vmem:[#allocation7 + $0x30] sm:$0xff]   ;;  %v3197_v2 = vld [vmem:[#allocation2 + $0xac] ss:$16 sps:$4 sm:$0xff]   ;;  %v3200_v8 = vld [vmem:[#allocation2 + $0xa8] ss:$16 sps:$4 sm:$0xff]  }
  0x4b   :  { %2554 = vmatpush3.bf16.msra.mxu0 %v3155_v23  ;;  %v124_v4 = vld [vmem:[%s4165_s2 + $0x48] sm:$0xff]  ;;  %v125_v5 = vld [vmem:[%s4165_s2 + $0x50] sm:$0xff]  ;;  %v126_v7 = vld [vmem:[%s4165_s2 + $0x58] sm:$0xff] }
  0x4c   :  { %2618 = vmatpush3.bf16.msra.mxu1 %v3156_v24  ;;  %2555 = vmatprep.subr.bf16.mxu0 %v3157_v25  ;;  %v3570_v6 = vld [vmem:[#allocation2 + $0xa0] ss:$16 sps:$4 sm:$0xff]   ;;  %v3575_v9 = vld [vmem:[#allocation2 + $0xc4] ss:$16 sps:$4 sm:$0xff]   ;;  %v3203_v10 = vld [vmem:[#allocation2 + $0xcc] ss:$16 sps:$4 sm:$0xff]  }
  0x4d   :  { %2619 = vmatprep.subr.bf16.mxu1 %v3158_v26  ;;  %778 = vperm.xlu1 %3132, %v122_v62   ;;  %v127_v11 = vld [vmem:[%s4165_s2 + $0x60] sm:$0xff]  ;;  %v128_v12 = vld [vmem:[%s4165_s2 + $0x68] sm:$0xff]  ;;  %v129_v13 = vld [vmem:[%s4165_s2 + $0x70] sm:$0xff] }
  0x4e   :  { %763 = vperm.xlu0 %3131, %v119_v55   ;;  %v3588_v14 = vld [vmem:[#allocation2 + $0xc0] ss:$16 sps:$4 sm:$0xff]   ;;  %v130_v15 = vld [vmem:[%s4165_s2 + $0x78] sm:$0xff]  ;;  %v3593_v17 = vld [vmem:[#allocation2 + $0xe4] ss:$16 sps:$4 sm:$0xff]  }
  0x4f   :  { %2556 = vmatpush3.bf16.msra.mxu0 %v3159_v27  ;;  %v3206_v16 = vld [vmem:[#allocation2 + $0xc8] ss:$16 sps:$4 sm:$0xff]   ;;  %v3209_v18 = vld [vmem:[#allocation2 + $0xec] ss:$16 sps:$4 sm:$0xff]   ;;  %v3597_v19 = vld [vmem:[#allocation2 + $0xe0] ss:$16 sps:$4 sm:$0xff]  }
  0x50   :  { %2620 = vmatpush3.bf16.msra.mxu1 %v3160_v28  ;;  %2557 = vmatprep.subr.bf16.mxu0 %v3161_v29  ;;  %v3212_v20 = vld [vmem:[#allocation2 + $0xe8] ss:$16 sps:$4 sm:$0xff]   ;;  %v3219_v23 = vld [vmem:[#allocation7 + $0x20] sm:$0xff]   ;;  %v3223_v27 = vld [vmem:[#allocation7 + $0x10] sm:$0xff]  }
  0x51   :  { %2621 = vmatprep.subr.bf16.mxu1 %v3162_v30  ;;  %788 = vperm.xlu1 %3132, %v124_v4   ;;  %v3217_v21 = vld [vmem:[#allocation7 + $0x28] sm:$0xff]   ;;  %v3220_v24 = vld [vmem:[#allocation7 + $0x60] sm:$0xff]   ;;  %v3221_v25 = vld [vmem:[#allocation7 + $0x18] sm:$0xff]  }
  0x52   :  { %773 = vperm.xlu0 %3131, %v121_v59   ;;  %v3218_v22 = vld [vmem:[#allocation7 + $0x68] sm:$0xff]   ;;  %v3222_v26 = vld [vmem:[#allocation7 + $0x58] sm:$0xff]   ;;  %v3224_v28 = vld [vmem:[#allocation7 + $0x50] sm:$0xff]  }
  0x53   :  { %2558 = vmatpush3.bf16.msra.mxu0 %v3163_v31  ;;  %v3225_v29 = vld [vmem:[#allocation7 + $0x8] sm:$0xff]   ;;  %v3227_v31 = vld [vmem:[#allocation7] sm:$0xff]  }
  0x54   :  { %2622 = vmatpush3.bf16.msra.mxu1 %v3164_v32  ;;  %2815 = vmatprep.subr.bf16.mxu0 %v3214_v58  ;;  %v3226_v30 = vld [vmem:[#allocation7 + $0x48] sm:$0xff]   ;;  %v3228_v32 = vld [vmem:[#allocation7 + $0x40] sm:$0xff]  }
  0x55   :  { %2847 = vmatprep.subr.bf16.mxu1 %v3213_v57  ;;  %798 = vperm.xlu1 %3132, %v126_v7  }
  0x56   :  { %580 = vmatmul.mubr.bf16.vlgmr.msra.gmra.mxu0 %v3519_v33  ;;  %783 = vperm.xlu0 %3131, %v123_v3  }
  0x57   :  { %677 = vmatmul.mubr.bf16.vlgmr.msra.gmra.mxu1 %v3168_v35  ;;  %587 = vmatprep.mubr.bf16.mxu0 %v3171_v37 }
  0x58   :  { %684 = vmatprep.mubr.bf16.mxu1 %v3173_v38  ;;  %2848 = vmatpush3.bf16.msra.mxu1 %v3213_v57 }
  0x59   :  { %2849 = vmatprep.subr.bf16.mxu1 %v3215_v60  ;;  %2816 = vmatpush3.bf16.msra.mxu0 %v3214_v58  ;;  %v838_v58 = vld [vmem:[%s4166_s3 + $0x8] sm:$0xff] }
  0x5a   :  { %2817 = vmatprep.subr.bf16.mxu0 %v3216_v63  ;;  %793 = vperm.xlu0 %3131, %v125_v5  }
  0x5b   :  { %808 = vperm.xlu1 %3132, %v128_v12  }
  0x5c   :  { %2850 = vmatpush3.bf16.msra.mxu1 %v3215_v60 }
  0x5d   :  { %2818 = vmatpush3.bf16.msra.mxu0 %v3216_v63  ;;  %2851 = vmatprep.subr.bf16.mxu1 %v3218_v22 }
  0x5e   :  { %588 = vmatmul.mubr.bf16.gmra.mxu0 %v3175_v39  ;;  %803 = vperm.xlu0 %3131, %v127_v11  }
  0x5f   :  { %685 = vmatmul.mubr.bf16.gmra.mxu1 %v3176_v40  ;;  %595 = vmatprep.mubr.bf16.mxu0 %v3177_v41 }
  0x60   :  { %692 = vmatprep.mubr.bf16.mxu1 %v3179_v42  ;;  %818 = vperm.xlu1 %3132, %v130_v15  }
  0x61   :  { %2819 = vmatprep.subr.bf16.mxu0 %v3217_v21  ;;  %2852 = vmatpush3.bf16.msra.mxu1 %v3218_v22 }
  0x62   :  { %813 = vperm.xlu0 %3131, %v129_v13   ;;  %2820 = vmatpush3.bf16.msra.mxu0 %v3217_v21 }
  0x63   :  { %2821 = vmatprep.subr.bf16.mxu0 %v3219_v23  ;;  %2853 = vmatprep.subr.bf16.mxu1 %v3220_v24 }
  0x65   :  { %2854 = vmatpush3.bf16.msra.mxu1 %v3220_v24 }
  0x66   :  { %596 = vmatmul.mubr.bf16.gmra.mxu0 %v3181_v43  ;;  %2855 = vmatprep.subr.bf16.mxu1 %v3222_v26 }
  0x67   :  { %693 = vmatmul.mubr.bf16.gmra.mxu1 %v3182_v44  ;;  %603 = vmatprep.mubr.bf16.mxu0 %v3183_v45 }
  0x68   :  { %700 = vmatprep.mubr.bf16.mxu1 %v3185_v46  ;;  %2822 = vmatpush3.bf16.msra.mxu0 %v3219_v23 }
  0x69   :  { %2823 = vmatprep.subr.bf16.mxu0 %v3221_v25  ;;  %2856 = vmatpush3.bf16.msra.mxu1 %v3222_v26  ;;  %v840_v26 = vld [vmem:[%s4166_s3 + $0x18] sm:$0xff] }
  0x6a   :  { %2857 = vmatprep.subr.bf16.mxu1 %v3224_v28 }
  0x6c   :  { %2824 = vmatpush3.bf16.msra.mxu0 %v3221_v25 }
  0x6d   :  { %2825 = vmatprep.subr.bf16.mxu0 %v3223_v27  ;;  %2858 = vmatpush3.bf16.msra.mxu1 %v3224_v28 }
  0x6e   :  { %604 = vmatmul.mubr.bf16.gmra.mxu0 %v3534_v50  ;;  %2859 = vmatprep.subr.bf16.mxu1 %v3226_v30 }
  0x6f   :  { %701 = vmatmul.mubr.bf16.gmra.mxu1 %v3188_v52  ;;  %611 = vmatprep.mubr.bf16.mxu0 %v3539_v53  ;;  %v837_v52 = vld [vmem:[%s4166_s3] sm:$0xff] }
  0x70   :  { %708 = vmatprep.mubr.bf16.mxu1 %v3191_v54  ;;  %2826 = vmatpush3.bf16.msra.mxu0 %v3223_v27 }
  0x71   :  { %2827 = vmatprep.subr.bf16.mxu0 %v3225_v29  ;;  %2860 = vmatpush3.bf16.msra.mxu1 %v3226_v30 }
  0x72   :  { %2861 = vmatprep.subr.bf16.mxu1 %v3228_v32 }
  0x74   :  { %2828 = vmatpush3.bf16.msra.mxu0 %v3225_v29 }
  0x75   :  { %2829 = vmatprep.subr.bf16.mxu0 %v3227_v31  ;;  %2862 = vmatpush3.bf16.msra.mxu1 %v3228_v32 }
  0x76   :  { %612 = vmatmul.mubr.bf16.gmra.mxu0 %v3552_v61 }
  0x77   :  { %709 = vmatmul.mubr.bf16.gmra.mxu1 %v3194_v0  ;;  %619 = vmatprep.mubr.bf16.mxu0 %v3557_v1 }
  0x78   :  { %716 = vmatprep.mubr.bf16.mxu1 %v3197_v2  ;;  %2830 = vmatpush3.bf16.msra.mxu0 %v3227_v31 }
  0x7e   :  { %620 = vmatmul.mubr.bf16.gmra.mxu0 %v3570_v6 }
  0x7f   :  { %717 = vmatmul.mubr.bf16.gmra.mxu1 %v3200_v8  ;;  %627 = vmatprep.mubr.bf16.mxu0 %v3575_v9 }
  0x80   :  { %724 = vmatprep.mubr.bf16.mxu1 %v3203_v10 }
  0x86   :  { %628 = vmatmul.mubr.bf16.gmra.mxu0 %v3588_v14 }
  0x87   :  { %725 = vmatmul.mubr.bf16.gmra.mxu1 %v3206_v16  ;;  %635 = vmatprep.mubr.bf16.mxu0 %v3593_v17 }
  0x88   :  { %732 = vmatprep.mubr.bf16.mxu1 %v3209_v18 }
  0x8e   :  { %636 = vmatmul.mubr.bf16.gmra.mxu0 %v3597_v19 }
  0x8f   :  { %733 = vmatmul.mubr.bf16.gmra.mxu1 %v3212_v20  ;;  %v839_v20 = vld [vmem:[%s4166_s3 + $0x10] sm:$0xff] }
  0xb9   :  { %v3612_v3 = vpop.permute.xlu1 %753 }
  0xbd   :  { %v3620_v25 = vpop.permute.xlu1 %758 }
  0xc1   :  { %v3600_v40 = vpop.permute.xlu0 %743 }
  0xc5   :  { %v3606_v55 = vpop.permute.xlu0 %748 }
 0x116   :  { %v2559_v35 = vpop.f32.mrf.mxu0 }
 0x117   :  { %v2623_v36 = vpop.f32.mrf.mxu1 }
 0x118   :  { %v2560_v37 = vpop.f32.mrf.mxu0 }
 0x119   :  { %v2561_v38 = vadd.f32 %v2560_v37, %v2559_v35  ;;  %v2624_v39 = vpop.f32.mrf.mxu1 }
 0x11a   :  { %v2625_v41 = vadd.f32 %v2624_v39, %v2623_v36  ;;  %v2562_v42 = vpop.f32.mrf.mxu0  ;;  %v3628_v39 = vpop.permute.xlu0 %763 }
 0x11b   :  { %v2626_v43 = vpop.f32.mrf.mxu1 }
 0x11c   :  { %v679_v44 = vadd.f32 %v2625_v41, %v2561_v38  ;;  %v2563_v45 = vpop.f32.mrf.mxu0 }
 0x11d   :  { %v2564_v46 = vadd.f32 %v2563_v45, %v2562_v42  ;;  %v2627_v47 = vpop.f32.mrf.mxu1 }
 0x11e   :  { %v821_v48 = vmul.f32 %v3600_v40, %v679_v44  ;;  %v2628_v49 = vadd.f32 %v2627_v47, %v2626_v43  ;;  %v2565_v51 = vpop.f32.mrf.mxu0 }
 0x11f   :  { %v2629_v54 = vpop.f32.mrf.mxu1 }
 0x120   :  { %v682_v56 = vadd.f32 %v2628_v49, %v2564_v46  ;;  %v2566_v57 = vpop.f32.mrf.mxu0  ;;  %v853_v62 = vadd.f32 %v837_v52, %v821_v48  ;;  %v841_v48 = vld [vmem:[%s4166_s3 + $0x20] sm:$0xff] }
 0x121   :  { %v2567_v59 = vadd.f32 %v2566_v57, %v2565_v51  ;;  %v2630_v60 = vpop.f32.mrf.mxu1  ;;  %v842_v57 = vld [vmem:[%s4166_s3 + $0x28] sm:$0xff] }
 0x122   :  { %v822_v63 = vmul.f32 %v3606_v55, %v682_v56  ;;  %v2631_v0 = vadd.f32 %v2630_v60, %v2629_v54  ;;  %v2568_v2 = vpop.f32.mrf.mxu0  ;;  %v869_v12 = vmax.f32 %v853_v62, 0.0  ;;  %v3636_v56 = vpop.permute.xlu1 %768 }
 0x123   :  { %v2632_v4 = vpop.f32.mrf.mxu1  ;;  %4180 = vst [vmem:[#allocation15_spill] sm:$0xff] %v3636_v56 }
 0x124   :  { %v854_v5 = vadd.f32 %v838_v58, %v822_v63  ;;  %v687_v7 = vadd.f32 %v2631_v0, %v2567_v59  ;;  %v2569_v8 = vpop.f32.mrf.mxu0 }
 0x125   :  { %v2570_v10 = vadd.f32 %v2569_v8, %v2568_v2  ;;  %v2633_v11 = vpop.f32.mrf.mxu1  ;;  %v3644_v8 = vpop.permute.xlu0 %773 }
 0x126   :  { %v870_v13 = vmax.f32 %v854_v5, 0.0  ;;  %v823_v15 = vmul.f32 %v3612_v3, %v687_v7  ;;  %v2634_v16 = vadd.f32 %v2633_v11, %v2632_v4  ;;  %v2571_v18 = vpop.f32.mrf.mxu0 }
 0x127   :  { %v2635_v21 = vpop.f32.mrf.mxu1 }
 0x128   :  { %v3618_v22 = vpack.c.bf16 %v870_v13, %v869_v12  ;;  %v690_v23 = vadd.f32 %v2634_v16, %v2570_v10  ;;  %v2572_v24 = vpop.f32.mrf.mxu0  ;;  %v855_v29 = vadd.f32 %v839_v20, %v823_v15  ;;  %v843_v20 = vld [vmem:[%s4166_s3 + $0x30] sm:$0xff] }
 0x129   :  { %v2573_v27 = vadd.f32 %v2572_v24, %v2571_v18  ;;  %v2636_v28 = vpop.f32.mrf.mxu1 }
 0x12a   :  { %v824_v30 = vmul.f32 %v3620_v25, %v690_v23  ;;  %v2637_v31 = vadd.f32 %v2636_v28, %v2635_v21  ;;  %2831 = vmatprep.mubr.bf16.mxu0 %v3618_v22  ;;  %2863 = vmatprep.mubr.bf16.mxu1 %v3618_v22  ;;  %v2574_v32 = vpop.f32.mrf.mxu0  ;;  %v871_v43 = vmax.f32 %v855_v29, 0.0  ;;  %v844_v28 = vld [vmem:[%s4166_s3 + $0x38] sm:$0xff] }
 0x12b   :  { %v2638_v35 = vpop.f32.mrf.mxu1 }
 0x12c   :  { %v856_v36 = vadd.f32 %v840_v26, %v824_v30  ;;  %v695_v37 = vadd.f32 %v2637_v31, %v2573_v27  ;;  %v2575_v38 = vpop.f32.mrf.mxu0  ;;  %v3652_v27 = vpop.permute.xlu1 %778 }
 0x12d   :  { %v2576_v41 = vadd.f32 %v2575_v38, %v2574_v32  ;;  %v2639_v42 = vpop.f32.mrf.mxu1 }
 0x12e   :  { %v872_v44 = vmax.f32 %v856_v36, 0.0  ;;  %v825_v45 = vmul.f32 %v3628_v39, %v695_v37  ;;  %v2640_v46 = vadd.f32 %v2639_v42, %v2638_v35  ;;  %v2577_v47 = vpop.f32.mrf.mxu0 }
 0x12f   :  { %v2641_v49 = vpop.f32.mrf.mxu1 }
 0x130   :  { %v3634_v51 = vpack.c.bf16 %v872_v44, %v871_v43  ;;  %v698_v52 = vadd.f32 %v2640_v46, %v2576_v41  ;;  %v2578_v54 = vpop.f32.mrf.mxu0  ;;  %v857_v60 = vadd.f32 %v841_v48, %v825_v45  ;;  %v3660_v43 = vpop.permute.xlu0 %783 }
 0x131   :  { %v2579_v58 = vadd.f32 %v2578_v54, %v2577_v47  ;;  %v2642_v59 = vpop.f32.mrf.mxu1  ;;  %4181 = vst [vmem:[#allocation16_spill] sm:$0xff] %v3660_v43  ;;  %v845_v54 = vld [vmem:[%s4166_s3 + $0x40] sm:$0xff] }
 0x132   :  { %v826_v62 = vmul.f32 %v3636_v56, %v698_v52  ;;  %v2643_v63 = vadd.f32 %v2642_v59, %v2641_v49  ;;  %2832 = vmatmul.mubr.bf16.vlgmr.msra.gmra.mxu0 %v3634_v51  ;;  %2864 = vmatmul.mubr.bf16.vlgmr.msra.gmra.mxu1 %v3634_v51  ;;  %v2580_v0 = vpop.f32.mrf.mxu0  ;;  %v873_v12 = vmax.f32 %v857_v60, 0.0 }
 0x133   :  { %v2644_v2 = vpop.f32.mrf.mxu1 }
 0x134   :  { %v858_v4 = vadd.f32 %v842_v57, %v826_v62  ;;  %v703_v5 = vadd.f32 %v2643_v63, %v2579_v58  ;;  %v2581_v7 = vpop.f32.mrf.mxu0  ;;  %v3668_v62 = vpop.permute.xlu1 %788  ;;  %v846_v63 = vld [vmem:[%s4166_s3 + $0x48] sm:$0xff] }
 0x135   :  { %v2582_v10 = vadd.f32 %v2581_v7, %v2580_v0  ;;  %v2645_v11 = vpop.f32.mrf.mxu1  ;;  %4182 = vst [vmem:[#allocation17_spill] sm:$0xff] %v3668_v62 }
 0x136   :  { %v874_v13 = vmax.f32 %v858_v4, 0.0  ;;  %v827_v15 = vmul.f32 %v3644_v8, %v703_v5  ;;  %v2646_v16 = vadd.f32 %v2645_v11, %v2644_v2  ;;  %v2583_v18 = vpop.f32.mrf.mxu0 }
 0x137   :  { %v2647_v21 = vpop.f32.mrf.mxu1 }
 0x138   :  { %v3650_v23 = vpack.c.bf16 %v874_v13, %v873_v12  ;;  %v706_v24 = vadd.f32 %v2646_v16, %v2582_v10  ;;  %v2584_v26 = vpop.f32.mrf.mxu0  ;;  %v859_v31 = vadd.f32 %v843_v20, %v827_v15  ;;  %v3676_v16 = vpop.permute.xlu0 %793 }
 0x139   :  { %v2585_v29 = vadd.f32 %v2584_v26, %v2583_v18  ;;  %v2648_v30 = vpop.f32.mrf.mxu1  ;;  %4183 = vst [vmem:[#allocation18_spill] sm:$0xff] %v3676_v16 }
 0x13a   :  { %v828_v32 = vmul.f32 %v3652_v27, %v706_v24  ;;  %v2649_v35 = vadd.f32 %v2648_v30, %v2647_v21  ;;  %2835 = vmatprep.mubr.bf16.mxu0 %v3650_v23  ;;  %2867 = vmatprep.mubr.bf16.mxu1 %v3650_v23  ;;  %v2586_v36 = vpop.f32.mrf.mxu0  ;;  %v875_v46 = vmax.f32 %v859_v31, 0.0  ;;  %v847_v30 = vld [vmem:[%s4166_s3 + $0x50] sm:$0xff] }
 0x13b   :  { %v2650_v37 = vpop.f32.mrf.mxu1 }
 0x13c   :  { %v860_v38 = vadd.f32 %v844_v28, %v828_v32  ;;  %v711_v41 = vadd.f32 %v2649_v35, %v2585_v29  ;;  %v2587_v42 = vpop.f32.mrf.mxu0 }
 0x13d   :  { %v2588_v44 = vadd.f32 %v2587_v42, %v2586_v36  ;;  %v2651_v45 = vpop.f32.mrf.mxu1 }
 0x13e   :  { %v876_v47 = vmax.f32 %v860_v38, 0.0  ;;  %v829_v48 = vmul.f32 %v3660_v43, %v711_v41  ;;  %v2652_v49 = vadd.f32 %v2651_v45, %v2650_v37  ;;  %v2589_v52 = vpop.f32.mrf.mxu0  ;;  %v3684_v37 = vpop.permute.xlu1 %798  ;;  %v848_v38 = vld [vmem:[%s4166_s3 + $0x58] sm:$0xff] }
 0x13f   :  { %v2653_v57 = vpop.f32.mrf.mxu1  ;;  %4184 = vst [vmem:[#allocation19_spill] sm:$0xff] %v3684_v37 }
 0x140   :  { %v3666_v58 = vpack.c.bf16 %v876_v47, %v875_v46  ;;  %v714_v59 = vadd.f32 %v2652_v49, %v2588_v44  ;;  %v2590_v60 = vpop.f32.mrf.mxu0  ;;  %v861_v4 = vadd.f32 %v845_v54, %v829_v48 }
 0x141   :  { %v2591_v0 = vadd.f32 %v2590_v60, %v2589_v52  ;;  %v2654_v2 = vpop.f32.mrf.mxu1 }
 0x142   :  { %v830_v5 = vmul.f32 %v3668_v62, %v714_v59  ;;  %v2655_v7 = vadd.f32 %v2654_v2, %v2653_v57  ;;  %2836 = vmatmul.mubr.bf16.gmra.mxu0 %v3666_v58  ;;  %2868 = vmatmul.mubr.bf16.gmra.mxu1 %v3666_v58  ;;  %v2592_v10 = vpop.f32.mrf.mxu0  ;;  %v877_v21 = vmax.f32 %v861_v4, 0.0  ;;  %v3692_v57 = vpop.permute.xlu0 %803 }
 0x143   :  { %v2656_v11 = vpop.f32.mrf.mxu1  ;;  %4185 = vst [vmem:[#allocation20_spill] sm:$0xff] %v3692_v57 }
 0x144   :  { %v862_v12 = vadd.f32 %v846_v63, %v830_v5  ;;  %v719_v13 = vadd.f32 %v2655_v7, %v2591_v0  ;;  %v2593_v15 = vpop.f32.mrf.mxu0  ;;  %v849_v7 = vld [vmem:[%s4166_s3 + $0x60] sm:$0xff] }
 0x145   :  { %v2594_v18 = vadd.f32 %v2593_v15, %v2592_v10  ;;  %v2657_v20 = vpop.f32.mrf.mxu1  ;;  %v3700_v15 = vpop.permute.xlu1 %808 }
 0x146   :  { %v878_v24 = vmax.f32 %v862_v12, 0.0  ;;  %v831_v26 = vmul.f32 %v3676_v16, %v719_v13  ;;  %v2658_v28 = vadd.f32 %v2657_v20, %v2656_v11  ;;  %v2595_v29 = vpop.f32.mrf.mxu0  ;;  %4186 = vst [vmem:[#allocation21_spill] sm:$0xff] %v3700_v15 }
 0x147   :  { %v2659_v31 = vpop.f32.mrf.mxu1 }
 0x148   :  { %v3682_v32 = vpack.c.bf16 %v878_v24, %v877_v21  ;;  %v722_v35 = vadd.f32 %v2658_v28, %v2594_v18  ;;  %v2596_v36 = vpop.f32.mrf.mxu0  ;;  %v863_v44 = vadd.f32 %v847_v30, %v831_v26  ;;  %v850_v18 = vld [vmem:[%s4166_s3 + $0x68] sm:$0xff] }
 0x149   :  { %v2597_v41 = vadd.f32 %v2596_v36, %v2595_v29  ;;  %v2660_v42 = vpop.f32.mrf.mxu1 }
 0x14a   :  { %v832_v45 = vmul.f32 %v3684_v37, %v722_v35  ;;  %v2661_v46 = vadd.f32 %v2660_v42, %v2659_v31  ;;  %2839 = vmatprep.mubr.bf16.mxu0 %v3682_v32  ;;  %2871 = vmatprep.mubr.bf16.mxu1 %v3682_v32  ;;  %v2598_v47 = vpop.f32.mrf.mxu0  ;;  %v879_v63 = vmax.f32 %v863_v44, 0.0 }
 0x14b   :  { %v2662_v48 = vpop.f32.mrf.mxu1 }
 0x14c   :  { %v864_v49 = vadd.f32 %v848_v38, %v832_v45  ;;  %v727_v52 = vadd.f32 %v2661_v46, %v2597_v41  ;;  %v2599_v54 = vpop.f32.mrf.mxu0  ;;  %v3708_v38 = vpop.permute.xlu0 %813 }
 0x14d   :  { %v2600_v59 = vadd.f32 %v2599_v54, %v2598_v47  ;;  %v2663_v60 = vpop.f32.mrf.mxu1  ;;  %4187 = vst [vmem:[#allocation22_spill] sm:$0xff] %v3708_v38  ;;  %v3716_v54 = vpop.permute.xlu1 %818 }
 0x14e   :  { %v880_v0 = vmax.f32 %v864_v49, 0.0  ;;  %v833_v2 = vmul.f32 %v3692_v57, %v727_v52  ;;  %v2664_v4 = vadd.f32 %v2663_v60, %v2662_v48  ;;  %v2601_v5 = vpop.f32.mrf.mxu0  ;;  %v851_v48 = vld [vmem:[%s4166_s3 + $0x70] sm:$0xff]  ;;  %4188 = vst [vmem:[#allocation23_spill] sm:$0xff] %v3716_v54 }
 0x14f   :  { %v2665_v10 = vpop.f32.mrf.mxu1 }
 0x150   :  { %v3698_v11 = vpack.c.bf16 %v880_v0, %v879_v63  ;;  %v730_v12 = vadd.f32 %v2664_v4, %v2600_v59  ;;  %v2602_v13 = vpop.f32.mrf.mxu0  ;;  %v865_v24 = vadd.f32 %v849_v7, %v833_v2  ;;  %v852_v59 = vld [vmem:[%s4166_s3 + $0x78] sm:$0xff] }
 0x151   :  { %v2603_v20 = vadd.f32 %v2602_v13, %v2601_v5  ;;  %v2666_v21 = vpop.f32.mrf.mxu1 }
 0x152   :  { %v834_v26 = vmul.f32 %v3700_v15, %v730_v12  ;;  %v2667_v28 = vadd.f32 %v2666_v21, %v2665_v10  ;;  %2840 = vmatmul.mubr.bf16.gmra.mxu0 %v3698_v11  ;;  %2872 = vmatmul.mubr.bf16.gmra.mxu1 %v3698_v11  ;;  %v2604_v29 = vpop.f32.mrf.mxu0  ;;  %v881_v44 = vmax.f32 %v865_v24, 0.0 }
 0x153   :  { %v2668_v30 = vpop.f32.mrf.mxu1 }
 0x154   :  { %v866_v31 = vadd.f32 %v850_v18, %v834_v26  ;;  %v735_v35 = vadd.f32 %v2667_v28, %v2603_v20  ;;  %v2605_v36 = vpop.f32.mrf.mxu0 }
 0x155   :  { %v2606_v41 = vadd.f32 %v2605_v36, %v2604_v29  ;;  %v2669_v42 = vpop.f32.mrf.mxu1 }
 0x156   :  { %v882_v45 = vmax.f32 %v866_v31, 0.0  ;;  %v835_v46 = vmul.f32 %v3708_v38, %v735_v35  ;;  %v2670_v47 = vadd.f32 %v2669_v42, %v2668_v30 }
 0x158   :  { %v3714_v49 = vpack.c.bf16 %v882_v45, %v881_v44  ;;  %v738_v52 = vadd.f32 %v2670_v47, %v2606_v41  ;;  %v867_v60 = vadd.f32 %v851_v48, %v835_v46 }
 0x15a   :  { %v836_v63 = vmul.f32 %v3716_v54, %v738_v52  ;;  %2843 = vmatprep.mubr.bf16.mxu0 %v3714_v49  ;;  %2875 = vmatprep.mubr.bf16.mxu1 %v3714_v49  ;;  %v883_v2 = vmax.f32 %v867_v60, 0.0 }
 0x15c   :  { %v868_v0 = vadd.f32 %v852_v59, %v836_v63 }
 0x15e   :  { %v884_v4 = vmax.f32 %v868_v0, 0.0 }
 0x160   :  { %v3724_v5 = vpack.c.bf16 %v884_v4, %v883_v2 }
 0x162   :  { %2844 = vmatmul.mubr.bf16.gmra.mxu0 %v3724_v5  ;;  %2876 = vmatmul.mubr.bf16.gmra.mxu1 %v3724_v5 }
 0x163   :  { %2895 = vmatprep.mubr.bf16.mxu0 %v3521_v34  ;;  %2927 = vmatprep.mubr.bf16.mxu1 %v3519_v33 }
 0x1f2   :  { %v3730_v7 = vpop.f32.mrf.mxu0  ;;  %v3732_v10 = vpop.f32.mrf.mxu1 }
 0x1f4   :  { %v3734_v12 = vpop.f32.mrf.mxu0  ;;  %v3736_v13 = vpop.f32.mrf.mxu1 }
 0x1f6   :  { %v2834_v18 = vpop.f32.mrf.mxu0  ;;  %v2866_v20 = vpop.f32.mrf.mxu1 }
 0x1f8   :  { %v3738_v21 = vpop.f32.mrf.mxu0  ;;  %v3740_v24 = vpop.f32.mrf.mxu1 }
 0x202   :  { %v2837_v26 = vpop.f32.mrf.mxu0  ;;  %v2869_v28 = vpop.f32.mrf.mxu1 }
 0x204   :  { %v1007_v29 = vpop.f32.mrf.mxu0  ;;  %v1177_v34 = vpop.f32.mrf.mxu1 }
 0x206   :  { %v2838_v30 = vpop.f32.mrf.mxu0  ;;  %v2870_v33 = vpop.f32.mrf.mxu1 }
 0x208   :  { %v1010_v31 = vpop.f32.mrf.mxu0  ;;  %v1180_v35 = vpop.f32.mrf.mxu1 }
 0x212   :  { %v2841_v36 = vpop.f32.mrf.mxu0  ;;  %v2873_v41 = vpop.f32.mrf.mxu1 }
 0x214   :  { %v1023_v42 = vpop.f32.mrf.mxu0  ;;  %v1193_v44 = vpop.f32.mrf.mxu1 }
 0x216   :  { %v2842_v45 = vpop.f32.mrf.mxu0  ;;  %v2874_v46 = vpop.f32.mrf.mxu1 }
 0x217   :  { %v1059_v37 = vpack.c.bf16 %v2842_v45, %v2841_v36  ;;  %v1229_v43 = vpack.c.bf16 %v2874_v46, %v2873_v41  ;;  %v3789_v36 = vld [vmem:[#allocation8 + $0x10] sm:$0xff]   ;;  %v3795_v41 = vld [vmem:[#allocation8 + $0x8] sm:$0xff]  }
 0x218   :  { %v1026_v47 = vpop.f32.mrf.mxu0  ;;  %v1196_v48 = vpop.f32.mrf.mxu1 }
 0x219   :  { %v1058_v16 = vpack.c.bf16 %v1026_v47, %v1023_v42  ;;  %v1228_v56 = vpack.c.bf16 %v1196_v48, %v1193_v44  ;;  %v3799_v42 = vld [vmem:[#allocation8] sm:$0xff]  }
 0x222   :  { %v2845_v52 = vpop.f32.mrf.mxu0  ;;  %v2877_v59 = vpop.f32.mrf.mxu1 }
 0x224   :  { %v1039_v60 = vpop.f32.mrf.mxu0  ;;  %v1209_v63 = vpop.f32.mrf.mxu1 }
 0x226   :  { %v2846_v0 = vpop.f32.mrf.mxu0  ;;  %v2878_v2 = vpop.f32.mrf.mxu1 }
 0x227   :  { %v1061_v4 = vpack.c.bf16 %v2846_v0, %v2845_v52  ;;  %v1231_v15 = vpack.c.bf16 %v2878_v2, %v2877_v59  ;;  %v1226_v52 = vpack.c.bf16 %v1180_v35, %v1177_v34  ;;  %v3766_v34 = vld [vmem:[#allocation8 + $0x38] sm:$0xff]  }
 0x228   :  { %v1042_v54 = vpop.f32.mrf.mxu0  ;;  %v1212_v57 = vpop.f32.mrf.mxu1  ;;  %v3785_v35 = vld [vmem:[#allocation8 + $0x18] sm:$0xff]  }
 0x229   :  { %v1060_v38 = vpack.c.bf16 %v1042_v54, %v1039_v60  ;;  %v1230_v62 = vpack.c.bf16 %v1212_v57, %v1209_v63  ;;  %2879 = vmatprep.subr.bf16.mxu0 %v1231_v15  ;;  %2911 = vmatprep.subr.bf16.mxu1 %v1061_v4  ;;  %v1057_v54 = vpack.c.bf16 %v2838_v30, %v2837_v26  ;;  %v3234_v26 = vld [vmem:[#allocation7 + $0x90] sm:$0xff]  }
 0x22a   :  { %2880 = vmatpush3.bf16.msra.mxu0 %v1231_v15  ;;  %2912 = vmatpush3.bf16.msra.mxu1 %v1061_v4  ;;  %v1227_v57 = vpack.c.bf16 %v2870_v33, %v2869_v28  ;;  %v1056_v15 = vpack.c.bf16 %v1010_v31, %v1007_v29  ;;  %v3243_v28 = vld [vmem:[#allocation7 + $0xc8] sm:$0xff]   ;;  %v3244_v29 = vld [vmem:[#allocation7 + $0xc0] sm:$0xff]   ;;  %v3769_v30 = vld [vmem:[#allocation8 + $0x30] sm:$0xff]  }
 0x22b   :  { %2881 = vmatprep.subr.bf16.mxu0 %v1230_v62  ;;  %2913 = vmatprep.subr.bf16.mxu1 %v1060_v38  ;;  %v3775_v33 = vld [vmem:[#allocation8 + $0x28] sm:$0xff]   ;;  %v3779_v31 = vld [vmem:[#allocation8 + $0x20] sm:$0xff]  }
 0x22e   :  { %2882 = vmatpush3.bf16.msra.mxu0 %v1230_v62  ;;  %2914 = vmatpush3.bf16.msra.mxu1 %v1060_v38  ;;  %v1055_v62 = vpack.c.bf16 %v2834_v18, %v3730_v7  ;;  %v1225_v38 = vpack.c.bf16 %v2866_v20, %v3732_v10  ;;  %v3317_v7 = vld [vmem:[#allocation2 + $0x24] ss:$16 sps:$4 sm:$0xff]   ;;  %v3318_v10 = vld [vmem:[#allocation2 + $0x20] ss:$16 sps:$4 sm:$0xff]  }
 0x22f   :  { %2883 = vmatprep.subr.bf16.mxu0 %v1229_v43  ;;  %2915 = vmatprep.subr.bf16.mxu1 %v1059_v37  ;;  %v3319_v18 = vld [vmem:[#allocation2 + $0x44] ss:$16 sps:$4 sm:$0xff]  }
 0x230   :  { %v3232_v20 = vld [vmem:[#allocation7 + $0xa0] sm:$0xff]  }
 0x232   :  { %2884 = vmatpush3.bf16.msra.mxu0 %v1229_v43  ;;  %2916 = vmatpush3.bf16.msra.mxu1 %v1059_v37  ;;  %v1224_v43 = vpack.c.bf16 %v3740_v24, %v3736_v13  ;;  %v3230_v37 = vld [vmem:[#allocation7 + $0xb0] sm:$0xff]   ;;  %v3231_v13 = vld [vmem:[#allocation7 + $0xa8] sm:$0xff]   ;;  %v3233_v24 = vld [vmem:[#allocation7 + $0x98] sm:$0xff]  }
 0x233   :  { %2885 = vmatprep.subr.bf16.mxu0 %v1228_v56  ;;  %2917 = vmatprep.subr.bf16.mxu1 %v1058_v16 }
 0x236   :  { %2886 = vmatpush3.bf16.msra.mxu0 %v1228_v56  ;;  %2918 = vmatpush3.bf16.msra.mxu1 %v1058_v16  ;;  %v1054_v56 = vpack.c.bf16 %v3738_v21, %v3734_v12  ;;  %v3229_v16 = vld [vmem:[#allocation7 + $0xb8] sm:$0xff]   ;;  %v3320_v12 = vld [vmem:[#allocation2 + $0x40] ss:$16 sps:$4 sm:$0xff]   ;;  %v3321_v21 = vld [vmem:[#allocation2 + $0x64] ss:$16 sps:$4 sm:$0xff]  }
 0x237   :  { %2887 = vmatprep.subr.bf16.mxu0 %v1227_v57  ;;  %2919 = vmatprep.subr.bf16.mxu1 %v1057_v54 }
 0x23a   :  { %2888 = vmatpush3.bf16.msra.mxu0 %v1227_v57  ;;  %2920 = vmatpush3.bf16.msra.mxu1 %v1057_v54 }
 0x23b   :  { %2889 = vmatprep.subr.bf16.mxu0 %v1226_v52  ;;  %2921 = vmatprep.subr.bf16.mxu1 %v1056_v15 }
 0x23e   :  { %2890 = vmatpush3.bf16.msra.mxu0 %v1226_v52  ;;  %2922 = vmatpush3.bf16.msra.mxu1 %v1056_v15 }
 0x23f   :  { %2891 = vmatprep.subr.bf16.mxu0 %v1225_v38  ;;  %2923 = vmatprep.subr.bf16.mxu1 %v1055_v62 }
 0x242   :  { %2892 = vmatpush3.bf16.msra.mxu0 %v1225_v38  ;;  %2924 = vmatpush3.bf16.msra.mxu1 %v1055_v62 }
 0x243   :  { %2893 = vmatprep.subr.bf16.mxu0 %v1224_v43  ;;  %2925 = vmatprep.subr.bf16.mxu1 %v1054_v56 }
 0x246   :  { %2894 = vmatpush3.bf16.msra.mxu0 %v1224_v43  ;;  %2926 = vmatpush3.bf16.msra.mxu1 %v1054_v56 }
 0x247   :  { %2943 = vmatprep.subr.bf16.mxu0 %v3229_v16 }
 0x249   :  { %2896 = vmatmul.mubr.bf16.vlgmr.msra.gmra.mxu0 %v3317_v7  ;;  %2928 = vmatmul.mubr.bf16.vlgmr.msra.gmra.mxu1 %v3318_v10 }
 0x24a   :  { %2944 = vmatpush3.bf16.msra.mxu0 %v3229_v16  ;;  %2899 = vmatprep.mubr.bf16.mxu0 %v3319_v18 }
 0x24b   :  { %2945 = vmatprep.subr.bf16.mxu0 %v3230_v37  ;;  %2931 = vmatprep.mubr.bf16.mxu1 %v3320_v12 }
 0x24e   :  { %2946 = vmatpush3.bf16.msra.mxu0 %v3230_v37 }
 0x24f   :  { %2947 = vmatprep.subr.bf16.mxu0 %v3231_v13 }
 0x251   :  { %2900 = vmatmul.mubr.bf16.gmra.mxu0 %v3321_v21  ;;  %2932 = vmatmul.mubr.bf16.gmra.mxu1 %v3534_v50  ;;  %v3235_v50 = vld [vmem:[#allocation7 + $0x88] sm:$0xff]  }
 0x252   :  { %2948 = vmatpush3.bf16.msra.mxu0 %v3231_v13  ;;  %2903 = vmatprep.mubr.bf16.mxu0 %v3539_v53  ;;  %v3236_v53 = vld [vmem:[#allocation7 + $0x80] sm:$0xff]  }
 0x253   :  { %2949 = vmatprep.subr.bf16.mxu0 %v3232_v20  ;;  %2935 = vmatprep.mubr.bf16.mxu1 %v3552_v61  ;;  %v3237_v61 = vld [vmem:[#allocation7 + $0xf8] sm:$0xff]  }
 0x256   :  { %2950 = vmatpush3.bf16.msra.mxu0 %v3232_v20 }
 0x257   :  { %2951 = vmatprep.subr.bf16.mxu0 %v3233_v24 }
 0x259   :  { %2904 = vmatmul.mubr.bf16.gmra.mxu0 %v3557_v1  ;;  %2936 = vmatmul.mubr.bf16.gmra.mxu1 %v3570_v6  ;;  %v3322_v1 = vld [vmem:[#allocation2 + $0x8] ss:$16 sps:$4 sm:$0xff]   ;;  %v3238_v6 = vld [vmem:[#allocation7 + $0xf0] sm:$0xff]  }
 0x25a   :  { %2952 = vmatpush3.bf16.msra.mxu0 %v3233_v24  ;;  %2907 = vmatprep.mubr.bf16.mxu0 %v3575_v9  ;;  %v3239_v9 = vld [vmem:[#allocation7 + $0xe8] sm:$0xff]  }
 0x25b   :  { %2953 = vmatprep.subr.bf16.mxu0 %v3234_v26  ;;  %2939 = vmatprep.mubr.bf16.mxu1 %v3588_v14  ;;  %v3240_v14 = vld [vmem:[#allocation7 + $0xe0] sm:$0xff]  }
 0x25e   :  { %2954 = vmatpush3.bf16.msra.mxu0 %v3234_v26 }
 0x25f   :  { %2955 = vmatprep.subr.bf16.mxu0 %v3235_v50 }
 0x261   :  { %2908 = vmatmul.mubr.bf16.gmra.mxu0 %v3593_v17  ;;  %2940 = vmatmul.mubr.bf16.gmra.mxu1 %v3597_v19  ;;  %v3241_v17 = vld [vmem:[#allocation7 + $0xd8] sm:$0xff]   ;;  %v3242_v19 = vld [vmem:[#allocation7 + $0xd0] sm:$0xff]  }
 0x262   :  { %2956 = vmatpush3.bf16.msra.mxu0 %v3235_v50  ;;  %2959 = vmatprep.mubr.bf16.mxu0 %v3618_v22 }
 0x263   :  { %2957 = vmatprep.subr.bf16.mxu0 %v3236_v53  ;;  %2991 = vmatprep.mubr.bf16.mxu1 %v3322_v1 }
 0x266   :  { %2958 = vmatpush3.bf16.msra.mxu0 %v3236_v53 }
 0x267   :  { %3007 = vmatprep.subr.bf16.mxu0 %v3237_v61 }
 0x269   :  { %2960 = vmatmul.mubr.bf16.vlgmr.msra.gmra.mxu0 %v3634_v51 }
 0x26a   :  { %2963 = vmatprep.mubr.bf16.mxu0 %v3650_v23  ;;  %3008 = vmatpush3.bf16.msra.mxu0 %v3237_v61 }
 0x26b   :  { %3009 = vmatprep.subr.bf16.mxu0 %v3238_v6 }
 0x26e   :  { %3010 = vmatpush3.bf16.msra.mxu0 %v3238_v6 }
 0x26f   :  { %3011 = vmatprep.subr.bf16.mxu0 %v3239_v9 }
 0x271   :  { %2964 = vmatmul.mubr.bf16.gmra.mxu0 %v3666_v58 }
 0x272   :  { %2967 = vmatprep.mubr.bf16.mxu0 %v3682_v32  ;;  %3012 = vmatpush3.bf16.msra.mxu0 %v3239_v9 }
 0x273   :  { %3013 = vmatprep.subr.bf16.mxu0 %v3240_v14 }
 0x276   :  { %3014 = vmatpush3.bf16.msra.mxu0 %v3240_v14 }
 0x277   :  { %3015 = vmatprep.subr.bf16.mxu0 %v3241_v17 }
 0x279   :  { %2968 = vmatmul.mubr.bf16.gmra.mxu0 %v3698_v11 }
 0x27a   :  { %2971 = vmatprep.mubr.bf16.mxu0 %v3714_v49  ;;  %3016 = vmatpush3.bf16.msra.mxu0 %v3241_v17 }
 0x27b   :  { %3017 = vmatprep.subr.bf16.mxu0 %v3242_v19 }
 0x27e   :  { %3018 = vmatpush3.bf16.msra.mxu0 %v3242_v19 }
 0x27f   :  { %3019 = vmatprep.subr.bf16.mxu0 %v3243_v28 }
 0x281   :  { %2972 = vmatmul.mubr.bf16.gmra.mxu0 %v3724_v5 }
 0x282   :  { %3020 = vmatpush3.bf16.msra.mxu0 %v3243_v28  ;;  %3023 = vmatprep.mubr.bf16.mxu0 %v3618_v22 }
 0x283   :  { %3021 = vmatprep.subr.bf16.mxu0 %v3244_v29 }
 0x286   :  { %3022 = vmatpush3.bf16.msra.mxu0 %v3244_v29 }
 0x287   :  { %3071 = vmatprep.subr.bf16.mxu0 %v3766_v34 }
 0x289   :  { %3024 = vmatmul.mubr.bf16.vlgmr.msra.gmra.mxu0 %v3634_v51 }
 0x28a   :  { %3027 = vmatprep.mubr.bf16.mxu0 %v3650_v23  ;;  %3072 = vmatpush3.bf16.msra.mxu0 %v3766_v34 }
 0x28b   :  { %3073 = vmatprep.subr.bf16.mxu0 %v3769_v30 }
 0x28e   :  { %3074 = vmatpush3.bf16.msra.mxu0 %v3769_v30 }
 0x28f   :  { %3075 = vmatprep.subr.bf16.mxu0 %v3775_v33 }
 0x291   :  { %3028 = vmatmul.mubr.bf16.gmra.mxu0 %v3666_v58 }
 0x292   :  { %3031 = vmatprep.mubr.bf16.mxu0 %v3682_v32  ;;  %3076 = vmatpush3.bf16.msra.mxu0 %v3775_v33 }
 0x293   :  { %3077 = vmatprep.subr.bf16.mxu0 %v3779_v31 }
 0x296   :  { %3078 = vmatpush3.bf16.msra.mxu0 %v3779_v31 }
 0x297   :  { %3079 = vmatprep.subr.bf16.mxu0 %v3785_v35 }
 0x299   :  { %3032 = vmatmul.mubr.bf16.gmra.mxu0 %v3698_v11 }
 0x29a   :  { %3035 = vmatprep.mubr.bf16.mxu0 %v3714_v49  ;;  %3080 = vmatpush3.bf16.msra.mxu0 %v3785_v35 }
 0x29b   :  { %3081 = vmatprep.subr.bf16.mxu0 %v3789_v36 }
 0x29e   :  { %3082 = vmatpush3.bf16.msra.mxu0 %v3789_v36 }
 0x29f   :  { %3083 = vmatprep.subr.bf16.mxu0 %v3795_v41 }
 0x2a1   :  { %3036 = vmatmul.mubr.bf16.gmra.mxu0 %v3724_v5 }
 0x2a2   :  { %3084 = vmatpush3.bf16.msra.mxu0 %v3795_v41  ;;  %3087 = vmatprep.mubr.bf16.mxu0 %v3618_v22 }
 0x2a3   :  { %3085 = vmatprep.subr.bf16.mxu0 %v3799_v42 }
 0x2a6   :  { %3086 = vmatpush3.bf16.msra.mxu0 %v3799_v42 }
 0x2a9   :  { %3088 = vmatmul.mubr.bf16.vlgmr.msra.gmra.mxu0 %v3634_v51 }
 0x2aa   :  { %3091 = vmatprep.mubr.bf16.mxu0 %v3650_v23 }
 0x2b1   :  { %3092 = vmatmul.mubr.bf16.gmra.mxu0 %v3666_v58 }
 0x309   :  { %v3809_v44 = vpop.f32.mrf.mxu0  ;;  %v3811_v45 = vpop.f32.mrf.mxu1 }
 0x30b   :  { %v3813_v46 = vpop.f32.mrf.mxu0  ;;  %v3815_v47 = vpop.f32.mrf.mxu1 }
 0x30d   :  { %v2898_v48 = vpop.f32.mrf.mxu0  ;;  %v2930_v22 = vpop.f32.mrf.mxu1 }
 0x30e   :  { %v3817_v59 = vadd.f32 %v2930_v22, %v2898_v48 }
 0x30f   :  { %v3819_v60 = vpop.f32.mrf.mxu0  ;;  %v3821_v63 = vpop.f32.mrf.mxu1 }
 0x311   :  { %v3823_v51 = vpop.f32.mrf.mxu0  ;;  %v3825_v23 = vpop.f32.mrf.mxu1 }
 0x313   :  { %v1282_v58 = vpop.f32.mrf.mxu0  ;;  %v1379_v0 = vpop.f32.mrf.mxu1 }
 0x314   :  { %v3827_v2 = vadd.f32 %v1379_v0, %v1282_v58 }
 0x315   :  { %v3829_v4 = vpop.f32.mrf.mxu0  ;;  %v3831_v54 = vpop.f32.mrf.mxu1 }
 0x317   :  { %v3833_v57 = vpop.f32.mrf.mxu0  ;;  %v3835_v15 = vpop.f32.mrf.mxu1 }
 0x319   :  { %v2905_v52 = vpop.f32.mrf.mxu0  ;;  %v2937_v62 = vpop.f32.mrf.mxu1 }
 0x31a   :  { %v3837_v38 = vadd.f32 %v2937_v62, %v2905_v52 }
 0x31b   :  { %v1298_v56 = vpop.f32.mrf.mxu0  ;;  %v1395_v43 = vpop.f32.mrf.mxu1 }
 0x31c   :  { %v3839_v16 = vadd.f32 %v1395_v43, %v1298_v56 }
 0x31d   :  { %v2906_v37 = vpop.f32.mrf.mxu0  ;;  %v2938_v7 = vpop.f32.mrf.mxu1 }
 0x31e   :  { %v3841_v10 = vadd.f32 %v2938_v7, %v2906_v37 }
 0x31f   :  { %v1301_v18 = vpop.f32.mrf.mxu0  ;;  %v1398_v12 = vpop.f32.mrf.mxu1 }
 0x320   :  { %v3843_v13 = vadd.f32 %v1398_v12, %v1301_v18 }
 0x321   :  { %v2909_v20 = vpop.f32.mrf.mxu0  ;;  %v2941_v21 = vpop.f32.mrf.mxu1 }
 0x322   :  { %4189 = vst [vmem:[#allocation24_spill] sm:$0xff] %v3843_v13  ;;  %v3845_v24 = vadd.f32 %v2941_v21, %v2909_v20 }
 0x323   :  { %v1314_v26 = vpop.f32.mrf.mxu0  ;;  %v1411_v50 = vpop.f32.mrf.mxu1 }
 0x324   :  { %4190 = vst [vmem:[#allocation25_spill] sm:$0xff] %v3845_v24  ;;  %v3847_v53 = vadd.f32 %v1411_v50, %v1314_v26 }
 0x325   :  { %v2910_v61 = vpop.f32.mrf.mxu0  ;;  %v2942_v1 = vpop.f32.mrf.mxu1 }
 0x326   :  { %4191 = vst [vmem:[#allocation26_spill] sm:$0xff] %v3847_v53  ;;  %v3849_v6 = vadd.f32 %v2942_v1, %v2910_v61 }
 0x327   :  { %v3851_v9 = vpop.f32.mrf.mxu0 }
 0x328   :  { %4192 = vst [vmem:[#allocation27_spill] sm:$0xff] %v3849_v6  ;;  %4193 = vst [vmem:[#allocation28_spill] sm:$0xff] %v3851_v9 }
 0x329   :  { %v2961_v14 = vpop.f32.mrf.mxu0 }
 0x32b   :  { %v1525_v17 = vpop.f32.mrf.mxu0 }
 0x32d   :  { %v2962_v19 = vpop.f32.mrf.mxu0 }
 0x32f   :  { %v1528_v28 = vpop.f32.mrf.mxu0 }
 0x331   :  { %v2965_v29 = vpop.f32.mrf.mxu0 }
 0x333   :  { %v1541_v48 = vpop.f32.mrf.mxu0 }
 0x335   :  { %v2966_v22 = vpop.f32.mrf.mxu0 }
 0x337   :  { %v1544_v58 = vpop.f32.mrf.mxu0 }
 0x339   :  { %v2969_v0 = vpop.f32.mrf.mxu0 }
 0x33b   :  { %v1557_v52 = vpop.f32.mrf.mxu0 }
 0x33d   :  { %v2970_v62 = vpop.f32.mrf.mxu0 }
 0x33e   :  { %v1593_v50 = vpack.c.bf16 %v2970_v62, %v2969_v0  ;;  %v1589_v0 = vpack.c.bf16 %v2962_v19, %v2961_v14  ;;  %v3325_v19 = vld [vmem:[#allocation2 + $0x68] ss:$16 sps:$4 sm:$0xff]  }
 0x33f   :  { %v1560_v56 = vpop.f32.mrf.mxu0 }
 0x340   :  { %v1592_v6 = vpack.c.bf16 %v1560_v56, %v1557_v52  ;;  %v1588_v52 = vpack.c.bf16 %v1528_v28, %v1525_v17  ;;  %v3326_v28 = vld [vmem:[#allocation2 + $0x88] ss:$16 sps:$4 sm:$0xff]  }
 0x341   :  { %v2973_v43 = vpop.f32.mrf.mxu0 }
 0x343   :  { %v1573_v37 = vpop.f32.mrf.mxu0 }
 0x345   :  { %v2974_v7 = vpop.f32.mrf.mxu0 }
 0x346   :  { %v1595_v18 = vpack.c.bf16 %v2974_v7, %v2973_v43  ;;  %v1591_v43 = vpack.c.bf16 %v2966_v22, %v2965_v29 }
 0x347   :  { %v1576_v12 = vpop.f32.mrf.mxu0 }
 0x348   :  { %v1594_v20 = vpack.c.bf16 %v1576_v12, %v1573_v37  ;;  %2975 = vmatprep.subr.bf16.mxu1 %v1595_v18 }
 0x349   :  { %2976 = vmatpush3.bf16.msra.mxu1 %v1595_v18  ;;  %v3853_v21 = vpop.f32.mrf.mxu0  ;;  %v1590_v18 = vpack.c.bf16 %v1544_v58, %v1541_v48  ;;  %v3323_v48 = vld [vmem:[#allocation2 + $0x28] ss:$16 sps:$4 sm:$0xff]  }
 0x34a   :  { %2977 = vmatprep.subr.bf16.mxu1 %v1594_v20  ;;  %v3324_v58 = vld [vmem:[#allocation2 + $0x48] ss:$16 sps:$4 sm:$0xff]  }
 0x34b   :  { %v3855_v26 = vpop.f32.mrf.mxu0 }
 0x34d   :  { %2978 = vmatpush3.bf16.msra.mxu1 %v1594_v20  ;;  %v3026_v61 = vpop.f32.mrf.mxu0 }
 0x34e   :  { %2979 = vmatprep.subr.bf16.mxu1 %v1593_v50 }
 0x34f   :  { %v1811_v1 = vpop.f32.mrf.mxu0 }
 0x351   :  { %2980 = vmatpush3.bf16.msra.mxu1 %v1593_v50  ;;  %v3029_v9 = vpop.f32.mrf.mxu0 }
 0x352   :  { %2981 = vmatprep.subr.bf16.mxu1 %v1592_v6 }
 0x353   :  { %v1824_v53 = vpop.f32.mrf.mxu0 }
 0x355   :  { %2982 = vmatpush3.bf16.msra.mxu1 %v1592_v6  ;;  %v3030_v37 = vpop.f32.mrf.mxu0 }
 0x356   :  { %2983 = vmatprep.subr.bf16.mxu1 %v1591_v43 }
 0x357   :  { %v1827_v7 = vpop.f32.mrf.mxu0 }
 0x359   :  { %2984 = vmatpush3.bf16.msra.mxu1 %v1591_v43  ;;  %v3033_v12 = vpop.f32.mrf.mxu0  ;;  %v1874_v43 = vpack.c.bf16 %v3030_v37, %v3029_v9  ;;  %v3332_v9 = vld [vmem:[#allocation2 + $0x4c] ss:$16 sps:$4 sm:$0xff]  }
 0x35a   :  { %2985 = vmatprep.subr.bf16.mxu1 %v1590_v18 }
 0x35b   :  { %v1840_v24 = vpop.f32.mrf.mxu0 }
 0x35d   :  { %2986 = vmatpush3.bf16.msra.mxu1 %v1590_v18  ;;  %v3034_v62 = vpop.f32.mrf.mxu0  ;;  %v1873_v18 = vpack.c.bf16 %v1827_v7, %v1824_v53  ;;  %v3331_v53 = vld [vmem:[#allocation2 + $0x2c] ss:$16 sps:$4 sm:$0xff]  }
 0x35e   :  { %2987 = vmatprep.subr.bf16.mxu1 %v1589_v0  ;;  %v1876_v14 = vpack.c.bf16 %v3034_v62, %v3033_v12  ;;  %v3329_v12 = vld [vmem:[#allocation2 + $0xe8] ss:$16 sps:$4 sm:$0xff]   ;;  %v3330_v62 = vld [vmem:[#allocation2 + $0xc] ss:$16 sps:$4 sm:$0xff]  }
 0x35f   :  { %v1843_v20 = vpop.f32.mrf.mxu0 }
 0x360   :  { %v1875_v17 = vpack.c.bf16 %v1843_v20, %v1840_v24  ;;  %v1871_v24 = vpack.c.bf16 %v1811_v1, %v3855_v26  ;;  %v3334_v26 = vld [vmem:[#allocation2 + $0x8c] ss:$16 sps:$4 sm:$0xff]  }
 0x361   :  { %2988 = vmatpush3.bf16.msra.mxu1 %v1589_v0  ;;  %v3037_v56 = vpop.f32.mrf.mxu0  ;;  %v3327_v0 = vld [vmem:[#allocation2 + $0xa8] ss:$16 sps:$4 sm:$0xff]  }
 0x362   :  { %2989 = vmatprep.subr.bf16.mxu1 %v1588_v52 }
 0x363   :  { %v1856_v50 = vpop.f32.mrf.mxu0 }
 0x365   :  { %2990 = vmatpush3.bf16.msra.mxu1 %v1588_v52  ;;  %v3038_v6 = vpop.f32.mrf.mxu0  ;;  %v3328_v52 = vld [vmem:[#allocation2 + $0xc8] ss:$16 sps:$4 sm:$0xff]  }
 0x366   :  { %v1878_v29 = vpack.c.bf16 %v3038_v6, %v3037_v56 }
 0x367   :  { %v1859_v22 = vpop.f32.mrf.mxu0 }
 0x368   :  { %v1877_v13 = vpack.c.bf16 %v1859_v22, %v1856_v50  ;;  %2992 = vmatmul.mubr.bf16.vlgmr.msra.gmra.mxu1 %v3323_v48  ;;  %3039 = vmatprep.subr.bf16.mxu1 %v1878_v29  ;;  %v1372_v22 = vadd.f32 %v3811_v45, %v3809_v44 }
 0x369   :  { %3040 = vmatpush3.bf16.msra.mxu1 %v1878_v29  ;;  %2995 = vmatprep.mubr.bf16.mxu1 %v3324_v58 }
 0x36a   :  { %3041 = vmatprep.subr.bf16.mxu1 %v1877_v13 }
 0x36d   :  { %3042 = vmatpush3.bf16.msra.mxu1 %v1877_v13  ;;  %v1872_v13 = vpack.c.bf16 %v3026_v61, %v3853_v21  ;;  %v3333_v21 = vld [vmem:[#allocation2 + $0x6c] ss:$16 sps:$4 sm:$0xff]  }
 0x36e   :  { %3043 = vmatprep.subr.bf16.mxu1 %v1876_v14  ;;  %v3336_v61 = vld [vmem:[#allocation2 + $0xcc] ss:$16 sps:$4 sm:$0xff]  }
 0x370   :  { %2996 = vmatmul.mubr.bf16.gmra.mxu1 %v3325_v19 }
 0x371   :  { %3044 = vmatpush3.bf16.msra.mxu1 %v1876_v14  ;;  %2999 = vmatprep.mubr.bf16.mxu1 %v3326_v28  ;;  %v2208_v14 = vlaneseq }
 0x372   :  { %3045 = vmatprep.subr.bf16.mxu1 %v1875_v17 }
 0x375   :  { %3046 = vmatpush3.bf16.msra.mxu1 %v1875_v17  ;;  %v1364_v17 = vadd.f32 %v3815_v47, %v3813_v46  ;;  %v3912_v47 = vld [vmem:[%s4169_s6] ss:$0 sm:$0xff]  ;;  %s3455_s6 = smov [#allocation10]  }
 0x376   :  { %3047 = vmatprep.subr.bf16.mxu1 %v1874_v43  ;;  %s2424_s30 = sshll.u32 %s3455_s6, 4  ;;  %s2425_s30 = int_to_ptr.vmem [resolvable:$true] %s2424_s30 }
 0x377   :  { %s3418_s8 = scalar_lea.vmem %s2425_s30, 2048  ;;  %p3423_p7 = scmp.lt.s32.totalorder %s2425_s30, %s2425_s30 }
 0x378   :  { %3000 = vmatmul.mubr.bf16.gmra.mxu1 %v3327_v0  ;;  %p3419_p6 = scmp.ne.s32.totalorder %s2425_s30, %s3418_s8  ;;  %p3424_p8 = scmp.lt.s32.totalorder %s3418_s8, %s3418_s8 }
 0x379   :  { %3048 = vmatpush3.bf16.msra.mxu1 %v1874_v43  ;;  %3003 = vmatprep.mubr.bf16.mxu1 %v3328_v52 }
 0x37a   :  { %3049 = vmatprep.subr.bf16.mxu1 %v1873_v18  ;;  %p3425_p9 = por %p3424_p8, %p3423_p7 }
 0x37c   :  { %p3426_p10 = pnand %p3425_p9, %p3419_p6 }
 0x37d   :  { %3050 = vmatpush3.bf16.msra.mxu1 %v1873_v18 }
 0x37e   :  { %3051 = vmatprep.subr.bf16.mxu1 %v1872_v13 }
 0x380   :  { %3004 = vmatmul.mubr.bf16.gmra.mxu1 %v3329_v12 }
 0x381   :  { %3052 = vmatpush3.bf16.msra.mxu1 %v1872_v13  ;;  %3055 = vmatprep.mubr.bf16.mxu1 %v3330_v62  ;;  %v3901_v13 = vand.u32 127, %v2208_v14  ;;  %v1388_v62 = vadd.f32 %v3825_v23, %v3823_v51 }
 0x382   :  { %3053 = vmatprep.subr.bf16.mxu1 %v1871_v24 }
 0x383   :  { %vm2210_vm0 = vcmp.lt.s32.totalorder %v3901_v13, 8 }
 0x385   :  { %3054 = vmatpush3.bf16.msra.mxu1 %v1871_v24  ;;  %v1367_v24 = vadd.f32 %v3821_v63, %v3819_v60 }
 0x386   :  { %3103 = vmatprep.subr.bf16.mxu1 %v3766_v34 }
 0x388   :  { %3056 = vmatmul.mubr.bf16.vlgmr.msra.gmra.mxu1 %v3331_v53 }
 0x389   :  { %3111 = vmatpush3.bf16.msra.mxu1 %v3766_v34  ;;  %3059 = vmatprep.mubr.bf16.mxu1 %v3332_v9  ;;  %v3335_v34 = vld [vmem:[#allocation2 + $0xac] ss:$16 sps:$4 sm:$0xff]  }
 0x38a   :  { %3104 = vmatprep.subr.bf16.mxu1 %v3769_v30 }
 0x38d   :  { %3112 = vmatpush3.bf16.msra.mxu1 %v3769_v30  ;;  %v3337_v30 = vld [vmem:[#allocation2 + $0xec] ss:$16 sps:$4 sm:$0xff]  }
 0x38e   :  { %3105 = vmatprep.subr.bf16.mxu1 %v3775_v33 }
 0x390   :  { %3060 = vmatmul.mubr.bf16.gmra.mxu1 %v3333_v21 }
 0x391   :  { %3113 = vmatpush3.bf16.msra.mxu1 %v3775_v33  ;;  %3063 = vmatprep.mubr.bf16.mxu1 %v3334_v26  ;;  %v3879_v33 = vpop.f32.mrf.mxu1 }
 0x392   :  { %3106 = vmatprep.subr.bf16.mxu1 %v3779_v31 }
 0x395   :  { %3114 = vmatpush3.bf16.msra.mxu1 %v3779_v31 }
 0x396   :  { %3107 = vmatprep.subr.bf16.mxu1 %v3785_v35 }
 0x398   :  { %3064 = vmatmul.mubr.bf16.gmra.mxu1 %v3335_v34 }
 0x399   :  { %3115 = vmatpush3.bf16.msra.mxu1 %v3785_v35  ;;  %3067 = vmatprep.mubr.bf16.mxu1 %v3336_v61  ;;  %v1391_v61 = vadd.f32 %v3831_v54, %v3829_v4 }
 0x39a   :  { %3108 = vmatprep.subr.bf16.mxu1 %v3789_v36 }
 0x39d   :  { %3116 = vmatpush3.bf16.msra.mxu1 %v3789_v36 }
 0x39e   :  { %3109 = vmatprep.subr.bf16.mxu1 %v3795_v41 }
 0x3a0   :  { %3068 = vmatmul.mubr.bf16.gmra.mxu1 %v3337_v30 }
 0x3a1   :  { %3117 = vmatpush3.bf16.msra.mxu1 %v3795_v41  ;;  %3095 = vmatprep.mubr.bf16.mxu1 %v3682_v32 }
 0x3a2   :  { %3110 = vmatprep.subr.bf16.mxu1 %v3799_v42 }
 0x3a5   :  { %3118 = vmatpush3.bf16.msra.mxu1 %v3799_v42 }
 0x3a8   :  { %3096 = vmatmul.mubr.bf16.vlgmr.msra.gmra.mxu1 %v3698_v11  ;;  %v3089_v11 = vpop.f32.mrf.mxu0 }
 0x3a9   :  { %3099 = vmatprep.mubr.bf16.mxu1 %v3714_v49 }
 0x3aa   :  { %v2106_v50 = vpop.f32.mrf.mxu0 }
 0x3ac   :  { %v3090_v48 = vpop.f32.mrf.mxu0 }
 0x3ae   :  { %v2109_v0 = vpop.f32.mrf.mxu0 }
 0x3b0   :  { %3100 = vmatmul.mubr.bf16.gmra.mxu1 %v3724_v5  ;;  %v3093_v60 = vpop.f32.mrf.mxu0 }
 0x428   :  { %v2993_v31 = vpop.f32.mrf.mxu1 }
 0x429   :  { %v1695_v19 = vadd.f32 %v2993_v31, %v1372_v22 }
 0x42a   :  { %v1630_v35 = vpop.f32.mrf.mxu1 }
 0x42b   :  { %v1693_v43 = vadd.f32 %v1630_v35, %v1364_v17 }
 0x42c   :  { %v2994_v36 = vpop.f32.mrf.mxu1 }
 0x42d   :  { %v1696_v44 = vadd.f32 %v2994_v36, %v3817_v59 }
 0x42e   :  { %v1633_v1 = vpop.f32.mrf.mxu1 }
 0x42f   :  { %v1694_v53 = vadd.f32 %v1633_v1, %v1367_v24  ;;  %v1383_v1 = vadd.f32 %v3835_v15, %v3833_v57 }
 0x430   :  { %v2997_v37 = vpop.f32.mrf.mxu1 }
 0x431   :  { %v1699_v63 = vadd.f32 %v2997_v37, %v1388_v62  ;;  %v2122_v37 = vpop.f32.mrf.mxu0 }
 0x432   :  { %v1646_v41 = vpop.f32.mrf.mxu1 }
 0x433   :  { %v1697_v30 = vadd.f32 %v1646_v41, %v3827_v2 }
 0x434   :  { %v2998_v7 = vpop.f32.mrf.mxu1 }
 0x435   :  { %v1700_v54 = vadd.f32 %v2998_v7, %v1391_v61 }
 0x436   :  { %v1649_v32 = vpop.f32.mrf.mxu1 }
 0x438   :  { %v3881_v20 = vpop.f32.mrf.mxu1 }
 0x43a   :  { %v3883_v56 = vpop.f32.mrf.mxu1 }
 0x43c   :  { %v3885_v42 = vpop.f32.mrf.mxu1 }
 0x43e   :  { %v3887_v49 = vpop.f32.mrf.mxu1 }
 0x440   :  { %v3889_v5 = vpop.f32.mrf.mxu1 }
 0x442   :  { %v3891_v6 = vpop.f32.mrf.mxu1 }
 0x444   :  { %v3893_v29 = vpop.f32.mrf.mxu1 }
 0x446   :  { %v3897_v58 = vpop.f32.mrf.mxu1 }
 0x448   :  { %v3057_v28 = vpop.f32.mrf.mxu1 }
 0x449   :  { %v1978_v18 = vadd.f32 %v3057_v28, %v1695_v19 }
 0x44a   :  { %v1913_v52 = vpop.f32.mrf.mxu1 }
 0x44b   :  { %v1994_v45 = vmul.f32 %v1978_v18, %v3612_v3  ;;  %v1976_v12 = vadd.f32 %v1913_v52, %v1693_v43  ;;  %v4194_v52 = vld [vmem:[#allocation15_spill] sm:$0xff] }
 0x44c   :  { %v3058_v46 = vpop.f32.mrf.mxu1 }
 0x44d   :  { %v1992_v9 = vmul.f32 %v1976_v12, %v3600_v40  ;;  %v1979_v21 = vadd.f32 %v3058_v46, %v1696_v44  ;;  %v2171_v26 = vadd.f32 %v3089_v11, %v1994_v45 }
 0x44e   :  { %v1916_v59 = vpop.f32.mrf.mxu1 }
 0x44f   :  { %v1995_v3 = vmul.f32 %v1979_v21, %v3620_v25  ;;  %v1977_v34 = vadd.f32 %v1916_v59, %v1694_v53  ;;  %v3918_v51 = vadd.f32 %v3912_v47, %v2171_v26  ;;  %v2169_v23 = vadd.f32 %v2106_v50, %v1992_v9 }
 0x450   :  { %v3061_v40 = vpop.f32.mrf.mxu1  ;;  %v1698_v50 = vadd.f32 %v1649_v32, %v1383_v1 }
 0x451   :  { %v1993_v31 = vmul.f32 %v1977_v34, %v3606_v55  ;;  %v1982_v35 = vadd.f32 %v3061_v40, %v1699_v63  ;;  %v2213_v36 = vsel %vm2210_vm0, %v3918_v51, -inf  ;;  %v3928_v25 = vadd.f32 %v3912_v47, %v2169_v23 }
 0x452   :  { %2231 = vmax.xlane.f32.xlu0 %v2213_v36  ;;  %v1929_v11 = vpop.f32.mrf.mxu1  ;;  %v2172_v4 = vadd.f32 %v3090_v48, %v1995_v3  ;;  %v3094_v48 = vpop.f32.mrf.mxu0  ;;  %v1703_v34 = vadd.f32 %v3881_v20, %v3837_v38  ;;  %v4196_v20 = vld [vmem:[#allocation18_spill] sm:$0xff] }
 0x453   :  { %v1998_v2 = vmul.f32 %v1982_v35, %v3644_v8  ;;  %v1980_v41 = vadd.f32 %v1929_v11, %v1697_v30  ;;  %v2170_v55 = vadd.f32 %v2109_v0, %v1993_v31  ;;  %v2211_v14 = vsel %vm2210_vm0, %v3928_v25, -inf }
 0x454   :  { %v3062_v22 = vpop.f32.mrf.mxu1  ;;  %v3937_v17 = vadd.f32 %v3912_v47, %v2172_v4  ;;  %v2125_v12 = vpop.f32.mrf.mxu0  ;;  %v1701_v30 = vadd.f32 %v3883_v56, %v3839_v16  ;;  %v1704_v35 = vadd.f32 %v3885_v42, %v3841_v10  ;;  %v4199_v56 = vld [vmem:[#allocation26_spill] sm:$0xff] }
 0x455   :  { %v1996_v57 = vmul.f32 %v1980_v41, %v3628_v39  ;;  %v1983_v15 = vadd.f32 %v3062_v22, %v1700_v54  ;;  %v3941_v19 = vadd.f32 %v3912_v47, %v2170_v55  ;;  %v2175_v7 = vadd.f32 %v3093_v60, %v1998_v2  ;;  %v4197_v55 = vld [vmem:[#allocation16_spill] sm:$0xff]  ;;  %v4198_v22 = vld [vmem:[#allocation25_spill] sm:$0xff] }
 0x456   :  { %v1932_v8 = vpop.f32.mrf.mxu1  ;;  %2227 = vmax.xlane.f32.xlu0 %v2211_v14  ;;  %v2214_v44 = vsel %vm2210_vm0, %v3937_v17, -inf  ;;  %v1707_v16 = vadd.f32 %v3889_v5, %v4198_v22  ;;  %v1705_v14 = vadd.f32 %v3891_v6, %v4199_v56 }
 0x457   :  { %v1999_v32 = vmul.f32 %v1983_v15, %v3652_v27  ;;  %v1981_v28 = vadd.f32 %v1932_v8, %v1698_v50  ;;  %v2212_v43 = vsel %vm2210_vm0, %v3941_v19, -inf  ;;  %v3948_v18 = vadd.f32 %v3912_v47, %v2175_v7  ;;  %v4201_v7 = vld [vmem:[#allocation28_spill] sm:$0xff] }
 0x458   :  { %v3065_v0 = vpop.f32.mrf.mxu1  ;;  %2229 = vmax.xlane.f32.xlu1 %v2212_v43  ;;  %v2173_v39 = vadd.f32 %v2122_v37, %v1996_v57  ;;  %v4195_v37 = vld [vmem:[#allocation24_spill] sm:$0xff]  ;;  %v4200_v57 = vld [vmem:[#allocation19_spill] sm:$0xff] }
 0x459   :  { %v1997_v24 = vmul.f32 %v1981_v28, %v4194_v52  ;;  %v2176_v45 = vadd.f32 %v3094_v48, %v1999_v32  ;;  %v2217_v62 = vsel %vm2210_vm0, %v3948_v18, -inf  ;;  %v1986_v40 = vadd.f32 %v3065_v0, %v1703_v34  ;;  %v4202_v0 = vld [vmem:[#allocation17_spill] sm:$0xff]  ;;  %v4203_v52 = vld [vmem:[#allocation27_spill] sm:$0xff] }
 0x45a   :  { %v1945_v27 = vpop.f32.mrf.mxu1  ;;  %2233 = vmax.xlane.f32.xlu0 %v2214_v44  ;;  %v3961_v53 = vadd.f32 %v3912_v47, %v2173_v39  ;;  %v1702_v11 = vadd.f32 %v3887_v49, %v4195_v37  ;;  %v1415_v48 = vadd.f32 %v3879_v33, %v4201_v7 }
 0x45b   :  { %v3958_v46 = vadd.f32 %v3912_v47, %v2176_v45  ;;  %v2174_v9 = vadd.f32 %v2125_v12, %v1997_v24  ;;  %v1984_v36 = vadd.f32 %v1945_v27, %v1701_v30  ;;  %v2002_v4 = vmul.f32 %v1986_v40, %v4196_v20  ;;  %v4206_v40 = vld [vmem:[#allocation23_spill] sm:$0xff] }
 0x45c   :  { %v3066_v21 = vpop.f32.mrf.mxu1  ;;  %2239 = vmax.xlane.f32.xlu1 %v2217_v62  ;;  %v2215_v59 = vsel %vm2210_vm0, %v3961_v53, -inf  ;;  %v1708_v24 = vadd.f32 %v3893_v29, %v4203_v52  ;;  %v1706_v33 = vadd.f32 %v3897_v58, %v1415_v48  ;;  %v4204_v62 = vld [vmem:[#allocation22_spill] sm:$0xff] }
 0x45d   :  { %v2218_v26 = vsel %vm2210_vm0, %v3958_v46, -inf  ;;  %v3967_v60 = vadd.f32 %v3912_v47, %v2174_v9  ;;  %v1987_v38 = vadd.f32 %v3066_v21, %v1704_v35  ;;  %v2000_v50 = vmul.f32 %v1984_v36, %v4197_v55  ;;  %v4207_v35 = vld [vmem:[#allocation21_spill] sm:$0xff] }
 0x45e   :  { %v1948_v63 = vpop.f32.mrf.mxu1  ;;  %2241 = vmax.xlane.f32.xlu0 %v2218_v26  ;;  %v4205_v26 = vld [vmem:[#allocation20_spill] sm:$0xff] }
 0x45f   :  { %v2216_v23 = vsel %vm2210_vm0, %v3967_v60, -inf  ;;  %v1985_v2 = vadd.f32 %v1948_v63, %v1702_v11  ;;  %v2003_v15 = vmul.f32 %v1987_v38, %v4200_v57 }
 0x460   :  { %v3069_v3 = vpop.f32.mrf.mxu1  ;;  %2235 = vmax.xlane.f32.xlu1 %v2215_v59 }
 0x461   :  { %v1990_v8 = vadd.f32 %v3069_v3, %v1707_v16  ;;  %v2001_v39 = vmul.f32 %v1985_v2, %v4202_v0 }
 0x462   :  { %v1961_v61 = vpop.f32.mrf.mxu1  ;;  %2237 = vmax.xlane.f32.xlu0 %v2216_v23 }
 0x463   :  { %v1988_v32 = vadd.f32 %v1961_v61, %v1705_v14  ;;  %v2006_v9 = vmul.f32 %v1990_v8, %v4204_v62 }
 0x464   :  { %v3070_v31 = vpop.f32.mrf.mxu1 }
 0x465   :  { %v1991_v27 = vadd.f32 %v3070_v31, %v1708_v24  ;;  %v2004_v63 = vmul.f32 %v1988_v32, %v4205_v26 }
 0x466   :  { %v1964_v1 = vpop.f32.mrf.mxu1 }
 0x467   :  { %v1989_v59 = vadd.f32 %v1964_v1, %v1706_v33  ;;  %v2007_v31 = vmul.f32 %v1991_v27, %v4206_v40 }
 0x468   :  { %v3097_v54 = vpop.f32.mrf.mxu1 }
 0x469   :  { %v2179_v41 = vadd.f32 %v3097_v54, %v2002_v4  ;;  %v2005_v36 = vmul.f32 %v1989_v59, %v4207_v35 }
 0x46a   :  { %v2138_v10 = vpop.f32.mrf.mxu1 }
 0x46b   :  { %v2177_v42 = vadd.f32 %v2138_v10, %v2000_v50  ;;  %v3991_v49 = vadd.f32 %v3912_v47, %v2179_v41 }
 0x46c   :  { %v3098_v28 = vpop.f32.mrf.mxu1 }
 0x46d   :  { %v2180_v43 = vadd.f32 %v3098_v28, %v2003_v15  ;;  %v2221_v5 = vsel %vm2210_vm0, %v3991_v49, -inf  ;;  %v4000_v6 = vadd.f32 %v3912_v47, %v2177_v42 }
 0x46e   :  { %v2141_v44 = vpop.f32.mrf.mxu1  ;;  %2247 = vmax.xlane.f32.xlu1 %v2221_v5 }
 0x46f   :  { %v2178_v45 = vadd.f32 %v2141_v44, %v2001_v39  ;;  %v4006_v12 = vadd.f32 %v3912_v47, %v2180_v43  ;;  %v2219_v3 = vsel %vm2210_vm0, %v4000_v6, -inf }
 0x470   :  { %v3101_v21 = vpop.f32.mrf.mxu1 }
 0x471   :  { %v2222_v29 = vsel %vm2210_vm0, %v4006_v12, -inf  ;;  %v4017_v58 = vadd.f32 %v3912_v47, %v2178_v45  ;;  %v2183_v23 = vadd.f32 %v3101_v21, %v2006_v9 }
 0x472   :  { %v2154_v34 = vpop.f32.mrf.mxu1  ;;  %2243 = vmax.xlane.f32.xlu1 %v2219_v3  ;;  %2249 = vmax.xlane.f32.xlu0 %v2222_v29 }
 0x473   :  { %v2181_v61 = vadd.f32 %v2154_v34, %v2004_v63  ;;  %v2220_v1 = vsel %vm2210_vm0, %v4017_v58, -inf  ;;  %v4031_v54 = vadd.f32 %v3912_v47, %v2183_v23 }
 0x474   :  { %v3102_v30 = vpop.f32.mrf.mxu1 }
 0x475   :  { %v4025_v37 = vadd.f32 %v3912_v47, %v2181_v61  ;;  %v2184_v38 = vadd.f32 %v3102_v30, %v2007_v31  ;;  %v2225_v41 = vsel %vm2210_vm0, %v4031_v54, -inf }
 0x476   :  { %v2157_v11 = vpop.f32.mrf.mxu1  ;;  %2245 = vmax.xlane.f32.xlu0 %v2220_v1 }
 0x477   :  { %v2182_v20 = vadd.f32 %v2157_v11, %v2005_v36  ;;  %v2223_v4 = vsel %vm2210_vm0, %v4025_v37, -inf  ;;  %v4043_v50 = vadd.f32 %v3912_v47, %v2184_v38 }
 0x478   :  { %2251 = vmax.xlane.f32.xlu1 %v2223_v4 }
 0x479   :  { %v4034_v2 = vadd.f32 %v3912_v47, %v2182_v20  ;;  %v2226_v22 = vsel %vm2210_vm0, %v4043_v50, -inf }
 0x47b   :  { %v2224_v55 = vsel %vm2210_vm0, %v4034_v2, -inf }
 0x47c   :  { %2255 = vmax.xlane.f32.xlu1 %v2225_v41  ;;  %2253 = vmax.xlane.f32.xlu0 %v2224_v55 }
 0x480   :  { %2257 = vmax.xlane.f32.xlu0 %v2226_v22 }
 0x4db   :  { %v2232_v16 = vpop.xlane.xlu0 %2231 }
 0x4dc   :  { %v4049_v56 = vsub.f32 %v3918_v51, %v2232_v16 }
 0x4de   :  { %v2279_v14 = vmul.f32 1.442695, %v4049_v56 }
 0x4df   :  { %v2228_v10 = vpop.xlane.xlu0 %2227 }
 0x4e0   :  { %3253 = vpow2.f32 %v2279_v14  ;;  %v4053_v42 = vsub.f32 %v3928_v25, %v2228_v10 }
 0x4e1   :  { %v2230_v47 = vpop.xlane.xlu1 %2229 }
 0x4e2   :  { %v2275_v57 = vmul.f32 1.442695, %v4053_v42  ;;  %v4057_v15 = vsub.f32 %v3941_v19, %v2230_v47 }
 0x4e3   :  { %v2234_v7 = vpop.xlane.xlu0 %2233 }
 0x4e4   :  { %3255 = vpow2.f32 %v2275_v57  ;;  %v4060_v48 = vsub.f32 %v3937_v17, %v2234_v7  ;;  %v2277_v51 = vmul.f32 1.442695, %v4057_v15 }
 0x4e5   :  { %v2240_v8 = vpop.xlane.xlu1 %2239 }
 0x4e6   :  { %v2281_v32 = vmul.f32 1.442695, %v4060_v48  ;;  %v4065_v28 = vsub.f32 %v3948_v18, %v2240_v8 }
 0x4e7   :  { %v2242_v25 = vpop.xlane.xlu0 %2241 }
 0x4e8   :  { %3257 = vpow2.f32 %v2281_v32  ;;  %v2287_v43 = vmul.f32 1.442695, %v4065_v28  ;;  %v4069_v19 = vsub.f32 %v3958_v46, %v2242_v25 }
 0x4e9   :  { %3259 = vpow2.f32 %v2277_v51  ;;  %v2236_v0 = vpop.xlane.xlu1 %2235 }
 0x4ea   :  { %3261 = vpow2.f32 %v2287_v43  ;;  %v2289_v17 = vmul.f32 1.442695, %v4069_v19  ;;  %v4073_v39 = vsub.f32 %v3961_v53, %v2236_v0 }
 0x4eb   :  { %v2238_v5 = vpop.xlane.xlu0 %2237 }
 0x4ec   :  { %v2283_v52 = vmul.f32 1.442695, %v4073_v39  ;;  %v4077_v18 = vsub.f32 %v3967_v60, %v2238_v5  ;;  %3263 = vpow2.f32 %v2289_v17 }
 0x4ed   :  { %v3254_v24 = vpop.eup %3253 }
 0x4ee   :  { %3265 = vpow2.f32 %v2283_v52  ;;  %v2285_v46 = vmul.f32 1.442695, %v4077_v18  ;;  %v2309_v44 = vsel %vm2210_vm0, %v3254_v24, 0.0 }
 0x4ef   :  { %2327 = vadd.xlane.f32.xlu1 %v2309_v44 }
 0x4f0   :  { %3267 = vpow2.f32 %v2285_v46 }
 0x4f1   :  { %v3256_v33 = vpop.eup %3255 }
 0x4f2   :  { %v2307_v53 = vsel %vm2210_vm0, %v3256_v33, 0.0 }
 0x4f3   :  { %2323 = vadd.xlane.f32.xlu1 %v2307_v53 }
 0x4f5   :  { %v3258_v45 = vpop.eup %3257 }
 0x4f6   :  { %v3260_v27 = vpop.eup %3259  ;;  %v2310_v60 = vsel %vm2210_vm0, %v3258_v45, 0.0 }
 0x4f7   :  { %v3262_v62 = vpop.eup %3261  ;;  %v2248_v9 = vpop.xlane.xlu1 %2247  ;;  %2329 = vadd.xlane.f32.xlu0 %v2310_v60  ;;  %v2308_v3 = vsel %vm2210_vm0, %v3260_v27, 0.0 }
 0x4f8   :  { %v4087_v21 = vsub.f32 %v3991_v49, %v2248_v9  ;;  %v2313_v26 = vsel %vm2210_vm0, %v3262_v62, 0.0 }
 0x4f9   :  { %2335 = vadd.xlane.f32.xlu1 %v2313_v26  ;;  %v3264_v63 = vpop.eup %3263 }
 0x4fa   :  { %v2295_v59 = vmul.f32 1.442695, %v4087_v21  ;;  %v2314_v35 = vsel %vm2210_vm0, %v3264_v63, 0.0 }
 0x4fb   :  { %v3266_v29 = vpop.eup %3265  ;;  %v2244_v34 = vpop.xlane.xlu1 %2243  ;;  %2325 = vadd.xlane.f32.xlu0 %v2308_v3 }
 0x4fc   :  { %v2250_v23 = vpop.xlane.xlu0 %2249  ;;  %3269 = vpow2.f32 %v2295_v59  ;;  %v4095_v61 = vsub.f32 %v4000_v6, %v2244_v34  ;;  %v2311_v30 = vsel %vm2210_vm0, %v3266_v29, 0.0 }
 0x4fd   :  { %v4098_v49 = vsub.f32 %v4006_v12, %v2250_v23  ;;  %2331 = vadd.xlane.f32.xlu1 %v2311_v30  ;;  %v3268_v36 = vpop.eup %3267 }
 0x4fe   :  { %v2291_v40 = vmul.f32 1.442695, %v4095_v61  ;;  %v2312_v20 = vsel %vm2210_vm0, %v3268_v36, 0.0 }
 0x4ff   :  { %v2297_v31 = vmul.f32 1.442695, %v4098_v49  ;;  %2337 = vadd.xlane.f32.xlu0 %v2314_v35 }
 0x500   :  { %v2246_v1 = vpop.xlane.xlu0 %2245  ;;  %3271 = vpow2.f32 %v2291_v40 }
 0x501   :  { %v4107_v6 = vsub.f32 %v4017_v58, %v2246_v1  ;;  %3273 = vpow2.f32 %v2297_v31  ;;  %v2252_v12 = vpop.xlane.xlu1 %2251 }
 0x502   :  { %v4111_v38 = vsub.f32 %v4025_v37, %v2252_v12 }
 0x503   :  { %v2293_v11 = vmul.f32 1.442695, %v4107_v6  ;;  %2333 = vadd.xlane.f32.xlu0 %v2312_v20 }
 0x504   :  { %v2299_v4 = vmul.f32 1.442695, %v4111_v38 }
 0x505   :  { %3275 = vpow2.f32 %v2293_v11  ;;  %v2256_v41 = vpop.xlane.xlu1 %2255  ;;  %v2254_v55 = vpop.xlane.xlu0 %2253 }
 0x506   :  { %3277 = vpow2.f32 %v2299_v4  ;;  %v4117_v58 = vsub.f32 %v4031_v54, %v2256_v41  ;;  %v4120_v22 = vsub.f32 %v4034_v2, %v2254_v55 }
 0x508   :  { %v2303_v16 = vmul.f32 1.442695, %v4117_v58  ;;  %v2301_v37 = vmul.f32 1.442695, %v4120_v22 }
 0x509   :  { %v3270_v14 = vpop.eup %3269  ;;  %v2258_v10 = vpop.xlane.xlu0 %2257 }
 0x50a   :  { %3279 = vpow2.f32 %v2303_v16  ;;  %v4125_v47 = vsub.f32 %v4043_v50, %v2258_v10  ;;  %v2317_v57 = vsel %vm2210_vm0, %v3270_v14, 0.0 }
 0x50b   :  { %3281 = vpow2.f32 %v2301_v37  ;;  %2343 = vadd.xlane.f32.xlu1 %v2317_v57 }
 0x50c   :  { %v2305_v54 = vmul.f32 1.442695, %v4125_v47 }
 0x50d   :  { %v3272_v7 = vpop.eup %3271 }
 0x50e   :  { %v3274_v2 = vpop.eup %3273  ;;  %3283 = vpow2.f32 %v2305_v54  ;;  %v2315_v51 = vsel %vm2210_vm0, %v3272_v7, 0.0 }
 0x50f   :  { %2339 = vadd.xlane.f32.xlu1 %v2315_v51  ;;  %v2318_v8 = vsel %vm2210_vm0, %v3274_v2, 0.0 }
 0x510   :  { %2345 = vadd.xlane.f32.xlu0 %v2318_v8 }
 0x512   :  { %v3276_v50 = vpop.eup %3275 }
 0x513   :  { %v2316_v32 = vsel %vm2210_vm0, %v3276_v50, 0.0  ;;  %v3278_v25 = vpop.eup %3277 }
 0x514   :  { %2341 = vadd.xlane.f32.xlu0 %v2316_v32  ;;  %v2319_v43 = vsel %vm2210_vm0, %v3278_v25, 0.0 }
 0x515   :  { %2347 = vadd.xlane.f32.xlu1 %v2319_v43 }
 0x517   :  { %v3280_v0 = vpop.eup %3279 }
 0x518   :  { %v3282_v17 = vpop.eup %3281  ;;  %v2321_v5 = vsel %vm2210_vm0, %v3280_v0, 0.0 }
 0x519   :  { %2351 = vadd.xlane.f32.xlu1 %v2321_v5  ;;  %v2320_v52 = vsel %vm2210_vm0, %v3282_v17, 0.0 }
 0x51a   :  { %2349 = vadd.xlane.f32.xlu0 %v2320_v52 }
 0x51b   :  { %v3284_v24 = vpop.eup %3283 }
 0x51c   :  { %v2322_v46 = vsel %vm2210_vm0, %v3284_v24, 0.0 }
 0x51e   :  { %2353 = vadd.xlane.f32.xlu0 %v2322_v46 }
 0x578   :  { %v2328_v44 = vpop.xlane.xlu1 %2327 }
 0x579   :  { %3285 = vlog2.f32 %v2328_v44 }
 0x57c   :  { %v2324_v33 = vpop.xlane.xlu1 %2323 }
 0x57d   :  { %3287 = vlog2.f32 %v2324_v33 }
 0x580   :  { %v2330_v53 = vpop.xlane.xlu0 %2329 }
 0x581   :  { %3289 = vlog2.f32 %v2330_v53 }
 0x582   :  { %v2336_v45 = vpop.xlane.xlu1 %2335 }
 0x583   :  { %3291 = vlog2.f32 %v2336_v45 }
 0x584   :  { %v2326_v27 = vpop.xlane.xlu0 %2325 }
 0x585   :  { %3293 = vlog2.f32 %v2326_v27 }
 0x586   :  { %v3286_v60 = vpop.eup %3285  ;;  %v2332_v62 = vpop.xlane.xlu1 %2331 }
 0x587   :  { %v2360_v9 = vmul.f32 0.6931472, %v3286_v60  ;;  %3295 = vlog2.f32 %v2332_v62 }
 0x588   :  { %v2338_v26 = vpop.xlane.xlu0 %2337 }
 0x589   :  { %v2389_v63 = vsub.f32 %v4049_v56, %v2360_v9  ;;  %3297 = vlog2.f32 %v2338_v26 }
 0x58a   :  { %v3288_v13 = vpop.eup %3287 }
 0x58b   :  { %2405 = vst [vmem:[#allocation10 + $0x10] sm:$0xff] %v2389_v63  ;;  %v2356_v59 = vmul.f32 0.6931472, %v3288_v13 }
 0x58c   :  { %v2334_v3 = vpop.xlane.xlu0 %2333 }
 0x58d   :  { %v2387_v29 = vsub.f32 %v4053_v42, %v2356_v59  ;;  %3299 = vlog2.f32 %v2334_v3 }
 0x58e   :  { %v3290_v34 = vpop.eup %3289 }
 0x58f   :  { %2403 = vst [vmem:[#allocation10] sm:$0xff] %v2387_v29  ;;  %v2362_v23 = vmul.f32 0.6931472, %v3290_v34 }
 0x590   :  { %v3292_v30 = vpop.eup %3291 }
 0x591   :  { %v2390_v40 = vsub.f32 %v4060_v48, %v2362_v23  ;;  %v2368_v31 = vmul.f32 0.6931472, %v3292_v30 }
 0x592   :  { %v3294_v35 = vpop.eup %3293 }
 0x593   :  { %2406 = vst [vmem:[#allocation10 + $0x18] sm:$0xff] %v2390_v40  ;;  %v2393_v36 = vsub.f32 %v4065_v28, %v2368_v31  ;;  %v2358_v56 = vmul.f32 0.6931472, %v3294_v35 }
 0x594   :  { %v3296_v1 = vpop.eup %3295  ;;  %v2344_v12 = vpop.xlane.xlu1 %2343 }
 0x595   :  { %2409 = vst [vmem:[#allocation10 + $0x30] sm:$0xff] %v2393_v36  ;;  %v2388_v11 = vsub.f32 %v4057_v15, %v2358_v56  ;;  %v2364_v20 = vmul.f32 0.6931472, %v3296_v1  ;;  %3301 = vlog2.f32 %v2344_v12 }
 0x596   :  { %v3298_v42 = vpop.eup %3297 }
 0x597   :  { %2404 = vst [vmem:[#allocation10 + $0x8] sm:$0xff] %v2388_v11  ;;  %v2391_v4 = vsub.f32 %v4073_v39, %v2364_v20  ;;  %v2370_v41 = vmul.f32 0.6931472, %v3298_v42 }
 0x598   :  { %v2340_v55 = vpop.xlane.xlu1 %2339 }
 0x599   :  { %2407 = vst [vmem:[#allocation10 + $0x20] sm:$0xff] %v2391_v4  ;;  %v2394_v48 = vsub.f32 %v4069_v19, %v2370_v41  ;;  %3303 = vlog2.f32 %v2340_v55  ;;  %v2346_v16 = vpop.xlane.xlu0 %2345 }
 0x59a   :  { %v3300_v28 = vpop.eup %3299  ;;  %3305 = vlog2.f32 %v2346_v16 }
 0x59b   :  { %2410 = vst [vmem:[#allocation10 + $0x38] sm:$0xff] %v2394_v48  ;;  %v2366_v37 = vmul.f32 0.6931472, %v3300_v28 }
 0x59d   :  { %v2392_v14 = vsub.f32 %v4077_v18, %v2366_v37  ;;  %v2342_v15 = vpop.xlane.xlu0 %2341 }
 0x59e   :  { %3307 = vlog2.f32 %v2342_v15  ;;  %v2348_v10 = vpop.xlane.xlu1 %2347 }
 0x59f   :  { %2408 = vst [vmem:[#allocation10 + $0x28] sm:$0xff] %v2392_v14  ;;  %3309 = vlog2.f32 %v2348_v10 }
 0x5a2   :  { %v3302_v57 = vpop.eup %3301  ;;  %v2352_v39 = vpop.xlane.xlu1 %2351 }
 0x5a3   :  { %v2376_v54 = vmul.f32 0.6931472, %v3302_v57  ;;  %3311 = vlog2.f32 %v2352_v39  ;;  %v2350_v7 = vpop.xlane.xlu0 %2349 }
 0x5a4   :  { %3313 = vlog2.f32 %v2350_v7 }
 0x5a5   :  { %v2397_v19 = vsub.f32 %v4087_v21, %v2376_v54 }
 0x5a6   :  { %v3304_v2 = vpop.eup %3303 }
 0x5a7   :  { %v3306_v51 = vpop.eup %3305  ;;  %2413 = vst [vmem:[#allocation10 + $0x50] sm:$0xff] %v2397_v19  ;;  %v2372_v8 = vmul.f32 0.6931472, %v3304_v2  ;;  %v2354_v50 = vpop.xlane.xlu0 %2353 }
 0x5a8   :  { %v2378_v32 = vmul.f32 0.6931472, %v3306_v51  ;;  %3315 = vlog2.f32 %v2354_v50 }
 0x5a9   :  { %v2395_v18 = vsub.f32 %v4095_v61, %v2372_v8 }
 0x5aa   :  { %v2398_v25 = vsub.f32 %v4098_v49, %v2378_v32 }
 0x5ab   :  { %v3308_v43 = vpop.eup %3307  ;;  %2411 = vst [vmem:[#allocation10 + $0x40] sm:$0xff] %v2395_v18 }
 0x5ac   :  { %v3310_v0 = vpop.eup %3309  ;;  %2414 = vst [vmem:[#allocation10 + $0x58] sm:$0xff] %v2398_v25  ;;  %v2374_v17 = vmul.f32 0.6931472, %v3308_v43 }
 0x5ad   :  { %v2380_v5 = vmul.f32 0.6931472, %v3310_v0 }
 0x5ae   :  { %v2396_v52 = vsub.f32 %v4107_v6, %v2374_v17 }
 0x5af   :  { %v2399_v21 = vsub.f32 %v4111_v38, %v2380_v5 }
 0x5b0   :  { %v3312_v24 = vpop.eup %3311  ;;  %2412 = vst [vmem:[#allocation10 + $0x48] sm:$0xff] %v2396_v52 }
 0x5b1   :  { %v3314_v46 = vpop.eup %3313  ;;  %2415 = vst [vmem:[#allocation10 + $0x60] sm:$0xff] %v2399_v21  ;;  %v2384_v44 = vmul.f32 0.6931472, %v3312_v24 }
 0x5b2   :  { %v2382_v33 = vmul.f32 0.6931472, %v3314_v46 }
 0x5b3   :  { %v2401_v61 = vsub.f32 %v4117_v58, %v2384_v44 }
 0x5b4   :  { %v2400_v49 = vsub.f32 %v4120_v22, %v2382_v33 }
 0x5b5   :  { %v3316_v53 = vpop.eup %3315  ;;  %2417 = vst [vmem:[#allocation10 + $0x70] sm:$0xff] %v2401_v61 }
 0x5b6   :  { %2416 = vst [vmem:[#allocation10 + $0x68] sm:$0xff] %v2400_v49  ;;  %v2386_v45 = vmul.f32 0.6931472, %v3316_v53 }
 0x5b8   :  { %v2402_v6 = vsub.f32 %v4125_v47, %v2386_v45 }
 0x5ba   :  { %2418 = vst [vmem:[#allocation10 + $0x78] sm:$0xff] %v2402_v6 }
 0x5bb   :  { %3429 = shalt.err (!%p3426_p10)
}
 0x5bc   :  { %s3456_s9 = smov 128   ;;  %s3457_s10 = smov 8  }
 0x5bd   :  { %2430 = dma.vmem_to_hbm [thread:$0]  %s2425_s30, 2048, %s4170_s7, [#allocation4], %s3456_s9, %s3456_s9, %s3457_s10  }
 0x5be   :  { %3444 = dma.done.wait [#allocation4], 2048  }
 0x5bf   :  { %3445 = vsyncadd [#allocation4], 4294965248 }
 0x5c0   :  { %2434 = vsyncpa [#allocation3], 1 }
 0x5c1   :  { %2435 = vsyncpa [#allocation6], 1 }
 0x5c2   :  { %2436 = vsyncpa [#allocation9], 1 }
 0x5c3   :  { %2437 = vsyncpa [#allocation4], 1 }

</bundles_post_ra>
